<compile_context>
chip_gen: v5e
topology: v5e:2x2
jax: 0.10.0
libtpu: 0.0.40
codegen_flags: <defaults>
</compile_context>

<pallas_src>
import functools

import jax
import jax.numpy as jnp
from jax import lax
from jax.experimental import pallas as pl
from jax.experimental.pallas import tpu as pltpu


def _round_up(v, m):
    return ((v + m - 1) // m) * m


# ----------------------------------------------------------------------------
# Fused Pallas kernel (both GraphNet layers + output transform)
# ----------------------------------------------------------------------------
def make_fused_precondnet_kernel(num_layers, skip_connections):
    def kernel(x_ref, ea_ref, rowr_ref, colr_ref, rowc_ref, colc_ref, *rest):
        param_refs = rest[:-1]
        out_ref = rest[-1]
        NP = out_ref.shape[0]           # padded node count (lanes)
        EP = ea_ref.shape[1]            # padded edge count (lanes)

        row_r = rowr_ref[...]           # (1, EP) int32, padded with -1
        col_r = colr_ref[...]           # (1, EP) int32, padded with -2
        row_c = rowc_ref[...]           # (EP, 1) int32
        col_c = colc_ref[...]           # (EP, 1) int32

        # One-hot gather/scatter operators, built once and reused across layers
        # (only O(E) ints are DMA'd from HBM).
        n_iota_ne = lax.broadcasted_iota(jnp.int32, (NP, EP), 0)   # node id on sublanes
        n_iota_en = lax.broadcasted_iota(jnp.int32, (EP, NP), 1)   # node id on lanes
        onehot_r = (n_iota_ne == row_r).astype(jnp.float32)        # (NP, EP) gather by row
        onehot_c = (n_iota_ne == col_r).astype(jnp.float32)        # (NP, EP) gather by col
        onehot_rt = (n_iota_en == row_c).astype(jnp.float32)       # (EP, NP) scatter by row
        onehot_ct = (n_iota_en == col_c).astype(jnp.float32)       # (EP, NP) scatter by col

        # Fold mean normalization into the aggregation operator (hoisted, reused
        # by every layer); empty rows aggregate to 0 like torch MeanAggregation.
        counts = jnp.sum(onehot_rt, axis=0, keepdims=True)         # (1, NP)
        inv_cnt = jnp.where(counts > 0.0,
                            1.0 / jnp.maximum(counts, 1.0), 0.0)
        onehot_rt_mean = onehot_rt * inv_cnt                       # (EP, NP)

        x = x_ref[...]                  # (1, NP) node embedding (lane-dense)
        a_edges = ea_ref[...]           # (1, EP) original edge attributes
        e_emb = a_edges                 # current edge embedding

        for l in range(num_layers):
            w1e, b1e, w2e, b2e, w1n, b1n, w2n, b2n = (
                r[...] for r in param_refs[8 * l: 8 * l + 8])

            # gather node features onto edges (one-hot contraction on MXU)
            xg_row = jnp.dot(x, onehot_r, preferred_element_type=jnp.float32)  # (1, EP)
            xg_col = jnp.dot(x, onehot_c, preferred_element_type=jnp.float32)  # (1, EP)

            # edge-block input features, in PyTorch concat order
            if l > 0 and skip_connections:
                feat_rows = (xg_row, xg_col, e_emb, a_edges)
            else:
                feat_rows = (xg_row, xg_col, e_emb)

            # edge MLP: Fe_in -> H -> 1 (VPU broadcast-FMA + sublane reduction)
            h = b1e + w1e[:, 0:1] * feat_rows[0]                    # (H, EP)
            for f in range(1, len(feat_rows)):
                h = h + w1e[:, f:f + 1] * feat_rows[f]
            h = jnp.maximum(h, 0.0)
            e_emb = jnp.sum(w2e * h, axis=0, keepdims=True) + b2e   # (1, EP)

            # mean aggregation over source node (single MXU contraction,
            # mean already folded into the operator)
            agg = jnp.dot(e_emb, onehot_rt_mean,
                          preferred_element_type=jnp.float32)       # (1, NP)

            # node MLP: [x, agg] -> H -> 1
            hn = b1n + w1n[:, 0:1] * x + w1n[:, 1:2] * agg          # (H, NP)
            hn = jnp.maximum(hn, 0.0)
            x = jnp.sum(w2n * hn, axis=0, keepdims=True) + b2n      # (1, NP)

        # ---- transform_output_matrix (training branch) -----------------------
        # diagonal: sqrt(exp(v)) == exp(0.5*v) (overflow-safe)
        ev = jnp.where(row_r == col_r, jnp.exp(0.5 * e_emb), e_emb)  # (1, EP)
        m_upper = (row_r <= col_r).astype(jnp.float32)
        m_lower = (col_r <= row_r).astype(jnp.float32)
        # place ev[e] at (row, col) if row <= col and at (col, row) if col <= row
        # (diagonal edges contribute twice, matching coalesce() of the COO tensor)
        contrib_a = jnp.dot(onehot_r * (ev * m_upper), onehot_ct,
                            preferred_element_type=jnp.float32)      # (NP, NP)
        contrib_b = jnp.dot(onehot_c * (ev * m_lower), onehot_rt,
                            preferred_element_type=jnp.float32)      # (NP, NP)
        out_ref[...] = contrib_a + contrib_b

    return kernel


# ----------------------------------------------------------------------------
# pallas_call wrapper
# ----------------------------------------------------------------------------
def _full_spec(shape):
    nd = len(shape)
    return pl.BlockSpec(shape, lambda i, _nd=nd: (0,) * _nd)


def precondnet_forward(params, x, edge_index, edge_attr, *, skip_connections=True):
    N = x.shape[0]
    E = edge_attr.shape[0]
    NP = _round_up(max(N, 8), 128)
    EP = _round_up(max(E, 8), 128)

    # Lane-dense, padded kernel inputs (features on sublanes, N/E on lanes).
    x_t = jnp.zeros((1, NP), jnp.float32).at[0, :N].set(x[:, 0])
    ea_t = jnp.zeros((1, EP), jnp.float32).at[0, :E].set(edge_attr[:, 0])
    row = edge_index[0].astype(jnp.int32)
    col = edge_index[1].astype(jnp.int32)
    # pad row with -1 and col with -2: padding matches no node and is never "diag"
    row_r = jnp.full((1, EP), -1, jnp.int32).at[0, :E].set(row)
    col_r = jnp.full((1, EP), -2, jnp.int32).at[0, :E].set(col)
    row_c = row_r.reshape(EP, 1)
    col_c = col_r.reshape(EP, 1)

    # Re-orient weights for the lane-dense kernel math.
    flat_params = []
    for (W1e, b1e, W2e, b2e, W1n, b1n, W2n, b2n) in params:
        H = W1e.shape[1]
        flat_params += [
            W1e.T,                  # (H, Fe_in)
            b1e.reshape(H, 1),
            W2e.reshape(H, 1),
            b2e.reshape(1, 1),
            W1n.T,                  # (H, 2)
            b1n.reshape(H, 1),
            W2n.reshape(H, 1),
            b2n.reshape(1, 1),
        ]

    inputs = (x_t, ea_t, row_r, col_r, row_c, col_c, *flat_params)
    kernel = make_fused_precondnet_kernel(len(params), skip_connections)

    out = pl.pallas_call(
        kernel,
        grid=(1,),
        in_specs=[_full_spec(a.shape) for a in inputs],
        out_specs=_full_spec((NP, NP)),
        out_shape=jax.ShapeDtypeStruct((NP, NP), jnp.float32),
        compiler_params=pltpu.CompilerParams(
            dimension_semantics=("arbitrary",)),
    )(*inputs)
    return out[:N, :N]


# ----------------------------------------------------------------------------
# Parameter init (deterministic, PyTorch nn.Linear default init)
# ----------------------------------------------------------------------------
def init_linear(key, fan_in, fan_out):
    k1, k2 = jax.random.split(key)
    bound = 1.0 / jnp.sqrt(jnp.float32(fan_in))
    W = jax.random.uniform(k1, (fan_in, fan_out), jnp.float32, -bound, bound)
    b = jax.random.uniform(k2, (fan_out,), jnp.float32, -bound, bound)
    return W, b


def init_precondnet_params(key, *, node_f=1, edge_f=1, hidden=32,
                           message_passing_steps=2, skip_connections=True):
    params = []
    for l in range(message_passing_steps):
        skip = (l > 0) and skip_connections
        add_edge = 1 if skip else 0
        edge_in_f = (edge_f + add_edge) + 2 * node_f
        edge_out_f = edge_f
        node_in_f = edge_out_f + node_f
        key, k1, k2, k3, k4 = jax.random.split(key, 5)
        W1e, b1e = init_linear(k1, edge_in_f, hidden)
        W2e, b2e = init_linear(k2, hidden, edge_out_f)
        W1n, b1n = init_linear(k3, node_in_f, hidden)
        W2n, b2n = init_linear(k4, hidden, node_f)
        params.append((W1e, b1e, W2e, b2e, W1n, b1n, W2n, b2n))
    return params


# ----------------------------------------------------------------------------
# Pure-JAX reference (PyTorch semantics, standard layout) for validation
# ----------------------------------------------------------------------------
def precondnet_reference(params, x, edge_index, edge_attr, *, skip_connections=True):
    row, col = edge_index[0], edge_index[1]
    N = x.shape[0]
    node = x
    e = edge_attr
    a_edges = edge_attr
    for l, (W1e, b1e, W2e, b2e, W1n, b1n, W2n, b2n) in enumerate(params):
        if l > 0 and skip_connections:
            e = jnp.concatenate([e, a_edges], axis=1)
        edge_in = jnp.concatenate([node[row], node[col], e], axis=1)
        e = jnp.maximum(edge_in @ W1e + b1e, 0.0) @ W2e + b2e
        sums = jnp.zeros((N, e.shape[1]), jnp.float32).at[row].add(e)
        cnts = jnp.zeros((N, 1), jnp.float32).at[row].add(1.0)
        inv = jnp.where(cnts > 0, 1.0 / jnp.maximum(cnts, 1.0), 0.0)
        agg = sums * inv
        h = jnp.maximum(jnp.concatenate([node, agg], axis=1) @ W1n + b1n, 0.0)
        node = h @ W2n + b2n
    diag = (row == col)[:, None]
    ev = jnp.where(diag, jnp.exp(0.5 * e), e)[:, 0]
    sym_index = jnp.concatenate(
        [edge_index, jnp.stack([edge_index[1], edge_index[0]], axis=0)], axis=1)
    sym_value = jnp.concatenate([ev, ev])
    m = (sym_index[0] <= sym_index[1]).astype(jnp.float32)
    return jnp.zeros((N, N), jnp.float32).at[sym_index[0], sym_index[1]].add(
        sym_value * m)


# ----------------------------------------------------------------------------
if __name__ == "__main__":
    N = 16                      # nodes
    HIDDEN = 32                 # latent_size
    STEPS = 2                   # message_passing_steps
    SKIP = True                 # skip_connections

    # Symmetric sparsity pattern: self loops + tri-diagonal band.
    rows, cols = [], []
    for i in range(N):
        rows.append(i); cols.append(i)
    for i in range(N - 1):
        rows.append(i); cols.append(i + 1)
        rows.append(i + 1); cols.append(i)
    edge_index = jnp.array([rows, cols], dtype=jnp.int32)       # (2, E)
    E = edge_index.shape[1]                                      # 46

    key = jax.random.PRNGKey(0)
    key, kx, ke = jax.random.split(key, 3)
    x = jax.random.normal(kx, (N, 1), jnp.float32)               # node features
    edge_attr = jax.random.normal(ke, (E, 1), jnp.float32)       # edge features

    params = init_precondnet_params(
        key, node_f=1, edge_f=1, hidden=HIDDEN,
        message_passing_steps=STEPS, skip_connections=SKIP)

    fwd = jax.jit(functools.partial(precondnet_forward, skip_connections=SKIP))
    out = jax.block_until_ready(fwd(params, x, edge_index, edge_attr))

    ref = precondnet_reference(params, x, edge_index, edge_attr,
                               skip_connections=SKIP)
    assert out.shape == (N, N)
    assert jnp.allclose(out, ref, atol=1e-4, rtol=1e-4), "mismatch vs reference"

    print("KERNEL_OK")
</pallas_src>

<mosaic_0001>
module attributes {stable_mosaic.version = 11 : i64} {
  func.func @kernel(%arg0: i32, %arg1: memref<1x128xf32, #tpu.memory_space<vmem>>, %arg2: memref<1x128xf32, #tpu.memory_space<vmem>>, %arg3: memref<1x128xi32, #tpu.memory_space<vmem>>, %arg4: memref<1x128xi32, #tpu.memory_space<vmem>>, %arg5: memref<128x1xi32, #tpu.memory_space<vmem>>, %arg6: memref<128x1xi32, #tpu.memory_space<vmem>>, %arg7: memref<32x3xf32, #tpu.memory_space<vmem>>, %arg8: memref<32x1xf32, #tpu.memory_space<vmem>>, %arg9: memref<32x1xf32, #tpu.memory_space<vmem>>, %arg10: memref<1x1xf32, #tpu.memory_space<vmem>>, %arg11: memref<32x2xf32, #tpu.memory_space<vmem>>, %arg12: memref<32x1xf32, #tpu.memory_space<vmem>>, %arg13: memref<32x1xf32, #tpu.memory_space<vmem>>, %arg14: memref<1x1xf32, #tpu.memory_space<vmem>>, %arg15: memref<32x4xf32, #tpu.memory_space<vmem>>, %arg16: memref<32x1xf32, #tpu.memory_space<vmem>>, %arg17: memref<32x1xf32, #tpu.memory_space<vmem>>, %arg18: memref<1x1xf32, #tpu.memory_space<vmem>>, %arg19: memref<32x2xf32, #tpu.memory_space<vmem>>, %arg20: memref<32x1xf32, #tpu.memory_space<vmem>>, %arg21: memref<32x1xf32, #tpu.memory_space<vmem>>, %arg22: memref<1x1xf32, #tpu.memory_space<vmem>>, %arg23: memref<128x128xf32, #tpu.memory_space<vmem>>) attributes {dimension_semantics = [#tpu.dimension_semantics<arbitrary>], iteration_bounds = array<i64: 1>, scalar_prefetch = 0 : i64, scratch_operands = 0 : i64, tpu.core_type = #tpu.core_type<tc>, window_params = [{pipeline_mode = #tpu.pipeline_mode<synchronous>, transform_indices = @transform_0, window_bounds = array<i64: 1, 128>}, {pipeline_mode = #tpu.pipeline_mode<synchronous>, transform_indices = @transform_1, window_bounds = array<i64: 1, 128>}, {pipeline_mode = #tpu.pipeline_mode<synchronous>, transform_indices = @transform_2, window_bounds = array<i64: 1, 128>}, {pipeline_mode = #tpu.pipeline_mode<synchronous>, transform_indices = @transform_3, window_bounds = array<i64: 1, 128>}, {pipeline_mode = #tpu.pipeline_mode<synchronous>, transform_indices = @transform_4, window_bounds = array<i64: 128, 1>}, {pipeline_mode = #tpu.pipeline_mode<synchronous>, transform_indices = @transform_5, window_bounds = array<i64: 128, 1>}, {pipeline_mode = #tpu.pipeline_mode<synchronous>, transform_indices = @transform_6, window_bounds = array<i64: 32, 3>}, {pipeline_mode = #tpu.pipeline_mode<synchronous>, transform_indices = @transform_7, window_bounds = array<i64: 32, 1>}, {pipeline_mode = #tpu.pipeline_mode<synchronous>, transform_indices = @transform_8, window_bounds = array<i64: 32, 1>}, {pipeline_mode = #tpu.pipeline_mode<synchronous>, transform_indices = @transform_9, window_bounds = array<i64: 1, 1>}, {pipeline_mode = #tpu.pipeline_mode<synchronous>, transform_indices = @transform_10, window_bounds = array<i64: 32, 2>}, {pipeline_mode = #tpu.pipeline_mode<synchronous>, transform_indices = @transform_11, window_bounds = array<i64: 32, 1>}, {pipeline_mode = #tpu.pipeline_mode<synchronous>, transform_indices = @transform_12, window_bounds = array<i64: 32, 1>}, {pipeline_mode = #tpu.pipeline_mode<synchronous>, transform_indices = @transform_13, window_bounds = array<i64: 1, 1>}, {pipeline_mode = #tpu.pipeline_mode<synchronous>, transform_indices = @transform_14, window_bounds = array<i64: 32, 4>}, {pipeline_mode = #tpu.pipeline_mode<synchronous>, transform_indices = @transform_15, window_bounds = array<i64: 32, 1>}, {pipeline_mode = #tpu.pipeline_mode<synchronous>, transform_indices = @transform_16, window_bounds = array<i64: 32, 1>}, {pipeline_mode = #tpu.pipeline_mode<synchronous>, transform_indices = @transform_17, window_bounds = array<i64: 1, 1>}, {pipeline_mode = #tpu.pipeline_mode<synchronous>, transform_indices = @transform_18, window_bounds = array<i64: 32, 2>}, {pipeline_mode = #tpu.pipeline_mode<synchronous>, transform_indices = @transform_19, window_bounds = array<i64: 32, 1>}, {pipeline_mode = #tpu.pipeline_mode<synchronous>, transform_indices = @transform_20, window_bounds = array<i64: 32, 1>}, {pipeline_mode = #tpu.pipeline_mode<synchronous>, transform_indices = @transform_21, window_bounds = array<i64: 1, 1>}, {pipeline_mode = #tpu.pipeline_mode<synchronous>, transform_indices = @transform_22, window_bounds = array<i64: 128, 128>}]} {
    %c0 = arith.constant 0 : index
    %c0_0 = arith.constant 0 : index
    %0 = vector.load %arg3[%c0, %c0_0] : memref<1x128xi32, #tpu.memory_space<vmem>>, vector<1x128xi32>
    %c0_1 = arith.constant 0 : index
    %c0_2 = arith.constant 0 : index
    %1 = vector.load %arg4[%c0_1, %c0_2] : memref<1x128xi32, #tpu.memory_space<vmem>>, vector<1x128xi32>
    %c0_3 = arith.constant 0 : index
    %c0_4 = arith.constant 0 : index
    %2 = vector.load %arg5[%c0_3, %c0_4] : memref<128x1xi32, #tpu.memory_space<vmem>>, vector<128x1xi32>
    %c0_5 = arith.constant 0 : index
    %c0_6 = arith.constant 0 : index
    %3 = vector.load %arg6[%c0_5, %c0_6] : memref<128x1xi32, #tpu.memory_space<vmem>>, vector<128x1xi32>
    %4 = tpu.iota {dimensions = array<i32: 0>} : vector<128x128xi32>
    %5 = tpu.iota {dimensions = array<i32: 1>} : vector<128x128xi32>
    %6 = vector.broadcast %0 : vector<1x128xi32> to vector<128x128xi32>
    %7 = arith.cmpi eq, %4, %6 : vector<128x128xi32>
    %8 = arith.extui %7 : vector<128x128xi1> to vector<128x128xi32>
    %9 = arith.sitofp %8 : vector<128x128xi32> to vector<128x128xf32>
    %10 = vector.broadcast %1 : vector<1x128xi32> to vector<128x128xi32>
    %11 = arith.cmpi eq, %4, %10 : vector<128x128xi32>
    %12 = arith.extui %11 : vector<128x128xi1> to vector<128x128xi32>
    %13 = arith.sitofp %12 : vector<128x128xi32> to vector<128x128xf32>
    %14 = vector.broadcast %2 : vector<128x1xi32> to vector<128x128xi32>
    %15 = arith.cmpi eq, %5, %14 : vector<128x128xi32>
    %16 = arith.extui %15 : vector<128x128xi1> to vector<128x128xi32>
    %17 = arith.sitofp %16 : vector<128x128xi32> to vector<128x128xf32>
    %18 = vector.broadcast %3 : vector<128x1xi32> to vector<128x128xi32>
    %19 = arith.cmpi eq, %5, %18 : vector<128x128xi32>
    %20 = arith.extui %19 : vector<128x128xi1> to vector<128x128xi32>
    %21 = arith.sitofp %20 : vector<128x128xi32> to vector<128x128xf32>
    %cst = arith.constant dense<0.000000e+00> : vector<128xf32>
    %22 = vector.multi_reduction <add>, %17, %cst [0] : vector<128x128xf32> to vector<128xf32>
    %23 = vector.shape_cast %22 : vector<128xf32> to vector<1x128xf32>
    %cst_7 = arith.constant 0.000000e+00 : f32
    %24 = vector.broadcast %cst_7 : f32 to vector<1x128xf32>
    %25 = arith.cmpf ogt, %23, %24 : vector<1x128xf32>
    %cst_8 = arith.constant 1.000000e+00 : f32
    %26 = vector.broadcast %cst_8 : f32 to vector<1x128xf32>
    %27 = arith.maximumf %23, %26 : vector<1x128xf32>
    %cst_9 = arith.constant 1.000000e+00 : f32
    %28 = vector.broadcast %cst_9 : f32 to vector<1x128xf32>
    %29 = arith.divf %28, %27 : vector<1x128xf32>
    %cst_10 = arith.constant 0.000000e+00 : f32
    %30 = vector.broadcast %cst_10 : f32 to vector<1x128xf32>
    %31 = arith.select %25, %29, %30 : vector<1x128xi1>, vector<1x128xf32>
    %32 = vector.broadcast %31 : vector<1x128xf32> to vector<128x128xf32>
    %33 = arith.mulf %17, %32 : vector<128x128xf32>
    %c0_11 = arith.constant 0 : index
    %c0_12 = arith.constant 0 : index
    %34 = vector.load %arg1[%c0_11, %c0_12] : memref<1x128xf32, #tpu.memory_space<vmem>>, vector<1x128xf32>
    %c0_13 = arith.constant 0 : index
    %c0_14 = arith.constant 0 : index
    %35 = vector.load %arg2[%c0_13, %c0_14] : memref<1x128xf32, #tpu.memory_space<vmem>>, vector<1x128xf32>
    %c0_15 = arith.constant 0 : index
    %c0_16 = arith.constant 0 : index
    %36 = vector.load %arg7[%c0_15, %c0_16] : memref<32x3xf32, #tpu.memory_space<vmem>>, vector<32x3xf32>
    %c0_17 = arith.constant 0 : index
    %c0_18 = arith.constant 0 : index
    %37 = vector.load %arg8[%c0_17, %c0_18] : memref<32x1xf32, #tpu.memory_space<vmem>>, vector<32x1xf32>
    %c0_19 = arith.constant 0 : index
    %c0_20 = arith.constant 0 : index
    %38 = vector.load %arg9[%c0_19, %c0_20] : memref<32x1xf32, #tpu.memory_space<vmem>>, vector<32x1xf32>
    %c0_21 = arith.constant 0 : index
    %c0_22 = arith.constant 0 : index
    %39 = vector.load %arg10[%c0_21, %c0_22] : memref<1x1xf32, #tpu.memory_space<vmem>>, vector<1x1xf32>
    %c0_23 = arith.constant 0 : index
    %c0_24 = arith.constant 0 : index
    %40 = vector.load %arg11[%c0_23, %c0_24] : memref<32x2xf32, #tpu.memory_space<vmem>>, vector<32x2xf32>
    %c0_25 = arith.constant 0 : index
    %c0_26 = arith.constant 0 : index
    %41 = vector.load %arg12[%c0_25, %c0_26] : memref<32x1xf32, #tpu.memory_space<vmem>>, vector<32x1xf32>
    %c0_27 = arith.constant 0 : index
    %c0_28 = arith.constant 0 : index
    %42 = vector.load %arg13[%c0_27, %c0_28] : memref<32x1xf32, #tpu.memory_space<vmem>>, vector<32x1xf32>
    %c0_29 = arith.constant 0 : index
    %c0_30 = arith.constant 0 : index
    %43 = vector.load %arg14[%c0_29, %c0_30] : memref<1x1xf32, #tpu.memory_space<vmem>>, vector<1x1xf32>
    %cst_31 = arith.constant dense<0.000000e+00> : vector<1x128xf32>
    %44 = tpu.matmul %34, %9, %cst_31 {dimension_numbers = #tpu.dot_dimension_numbers<[1], [0], [0], [1], [0, 0, 1, 1], [], []>} : vector<1x128xf32>, vector<128x128xf32>, vector<1x128xf32> -> vector<1x128xf32>
    %cst_32 = arith.constant dense<0.000000e+00> : vector<1x128xf32>
    %45 = tpu.matmul %34, %13, %cst_32 {dimension_numbers = #tpu.dot_dimension_numbers<[1], [0], [0], [1], [0, 0, 1, 1], [], []>} : vector<1x128xf32>, vector<128x128xf32>, vector<1x128xf32> -> vector<1x128xf32>
    %46 = vector.extract_strided_slice %36 {offsets = [0, 0], sizes = [32, 1], strides = [1, 1]} : vector<32x3xf32> to vector<32x1xf32>
    %47 = vector.broadcast %46 : vector<32x1xf32> to vector<32x128xf32>
    %48 = vector.broadcast %44 : vector<1x128xf32> to vector<32x128xf32>
    %49 = arith.mulf %47, %48 : vector<32x128xf32>
    %50 = vector.broadcast %37 : vector<32x1xf32> to vector<32x128xf32>
    %51 = arith.addf %50, %49 : vector<32x128xf32>
    %52 = vector.extract_strided_slice %36 {offsets = [0, 1], sizes = [32, 1], strides = [1, 1]} : vector<32x3xf32> to vector<32x1xf32>
    %53 = vector.broadcast %52 : vector<32x1xf32> to vector<32x128xf32>
    %54 = vector.broadcast %45 : vector<1x128xf32> to vector<32x128xf32>
    %55 = arith.mulf %53, %54 : vector<32x128xf32>
    %56 = arith.addf %51, %55 : vector<32x128xf32>
    %57 = vector.extract_strided_slice %36 {offsets = [0, 2], sizes = [32, 1], strides = [1, 1]} : vector<32x3xf32> to vector<32x1xf32>
    %58 = vector.broadcast %57 : vector<32x1xf32> to vector<32x128xf32>
    %59 = vector.broadcast %35 : vector<1x128xf32> to vector<32x128xf32>
    %60 = arith.mulf %58, %59 : vector<32x128xf32>
    %61 = arith.addf %56, %60 : vector<32x128xf32>
    %cst_33 = arith.constant 0.000000e+00 : f32
    %62 = vector.broadcast %cst_33 : f32 to vector<32x128xf32>
    %63 = arith.maximumf %61, %62 : vector<32x128xf32>
    %64 = vector.broadcast %38 : vector<32x1xf32> to vector<32x128xf32>
    %65 = arith.mulf %64, %63 : vector<32x128xf32>
    %cst_34 = arith.constant dense<0.000000e+00> : vector<128xf32>
    %66 = vector.multi_reduction <add>, %65, %cst_34 [0] : vector<32x128xf32> to vector<128xf32>
    %67 = vector.shape_cast %66 : vector<128xf32> to vector<1x128xf32>
    %68 = vector.broadcast %39 : vector<1x1xf32> to vector<1x128xf32>
    %69 = arith.addf %67, %68 : vector<1x128xf32>
    %cst_35 = arith.constant dense<0.000000e+00> : vector<1x128xf32>
    %70 = tpu.matmul %69, %33, %cst_35 {dimension_numbers = #tpu.dot_dimension_numbers<[1], [0], [0], [1], [0, 0, 1, 1], [], []>} : vector<1x128xf32>, vector<128x128xf32>, vector<1x128xf32> -> vector<1x128xf32>
    %71 = vector.extract_strided_slice %40 {offsets = [0, 0], sizes = [32, 1], strides = [1, 1]} : vector<32x2xf32> to vector<32x1xf32>
    %72 = vector.broadcast %71 : vector<32x1xf32> to vector<32x128xf32>
    %73 = vector.broadcast %34 : vector<1x128xf32> to vector<32x128xf32>
    %74 = arith.mulf %72, %73 : vector<32x128xf32>
    %75 = vector.broadcast %41 : vector<32x1xf32> to vector<32x128xf32>
    %76 = arith.addf %75, %74 : vector<32x128xf32>
    %77 = vector.extract_strided_slice %40 {offsets = [0, 1], sizes = [32, 1], strides = [1, 1]} : vector<32x2xf32> to vector<32x1xf32>
    %78 = vector.broadcast %77 : vector<32x1xf32> to vector<32x128xf32>
    %79 = vector.broadcast %70 : vector<1x128xf32> to vector<32x128xf32>
    %80 = arith.mulf %78, %79 : vector<32x128xf32>
    %81 = arith.addf %76, %80 : vector<32x128xf32>
    %cst_36 = arith.constant 0.000000e+00 : f32
    %82 = vector.broadcast %cst_36 : f32 to vector<32x128xf32>
    %83 = arith.maximumf %81, %82 : vector<32x128xf32>
    %84 = vector.broadcast %42 : vector<32x1xf32> to vector<32x128xf32>
    %85 = arith.mulf %84, %83 : vector<32x128xf32>
    %cst_37 = arith.constant dense<0.000000e+00> : vector<128xf32>
    %86 = vector.multi_reduction <add>, %85, %cst_37 [0] : vector<32x128xf32> to vector<128xf32>
    %87 = vector.shape_cast %86 : vector<128xf32> to vector<1x128xf32>
    %88 = vector.broadcast %43 : vector<1x1xf32> to vector<1x128xf32>
    %89 = arith.addf %87, %88 : vector<1x128xf32>
    %c0_38 = arith.constant 0 : index
    %c0_39 = arith.constant 0 : index
    %90 = vector.load %arg15[%c0_38, %c0_39] : memref<32x4xf32, #tpu.memory_space<vmem>>, vector<32x4xf32>
    %c0_40 = arith.constant 0 : index
    %c0_41 = arith.constant 0 : index
    %91 = vector.load %arg16[%c0_40, %c0_41] : memref<32x1xf32, #tpu.memory_space<vmem>>, vector<32x1xf32>
    %c0_42 = arith.constant 0 : index
    %c0_43 = arith.constant 0 : index
    %92 = vector.load %arg17[%c0_42, %c0_43] : memref<32x1xf32, #tpu.memory_space<vmem>>, vector<32x1xf32>
    %c0_44 = arith.constant 0 : index
    %c0_45 = arith.constant 0 : index
    %93 = vector.load %arg18[%c0_44, %c0_45] : memref<1x1xf32, #tpu.memory_space<vmem>>, vector<1x1xf32>
    %cst_46 = arith.constant dense<0.000000e+00> : vector<1x128xf32>
    %94 = tpu.matmul %89, %9, %cst_46 {dimension_numbers = #tpu.dot_dimension_numbers<[1], [0], [0], [1], [0, 0, 1, 1], [], []>} : vector<1x128xf32>, vector<128x128xf32>, vector<1x128xf32> -> vector<1x128xf32>
    %cst_47 = arith.constant dense<0.000000e+00> : vector<1x128xf32>
    %95 = tpu.matmul %89, %13, %cst_47 {dimension_numbers = #tpu.dot_dimension_numbers<[1], [0], [0], [1], [0, 0, 1, 1], [], []>} : vector<1x128xf32>, vector<128x128xf32>, vector<1x128xf32> -> vector<1x128xf32>
    %96 = vector.extract_strided_slice %90 {offsets = [0, 0], sizes = [32, 1], strides = [1, 1]} : vector<32x4xf32> to vector<32x1xf32>
    %97 = vector.broadcast %96 : vector<32x1xf32> to vector<32x128xf32>
    %98 = vector.broadcast %94 : vector<1x128xf32> to vector<32x128xf32>
    %99 = arith.mulf %97, %98 : vector<32x128xf32>
    %100 = vector.broadcast %91 : vector<32x1xf32> to vector<32x128xf32>
    %101 = arith.addf %100, %99 : vector<32x128xf32>
    %102 = vector.extract_strided_slice %90 {offsets = [0, 1], sizes = [32, 1], strides = [1, 1]} : vector<32x4xf32> to vector<32x1xf32>
    %103 = vector.broadcast %102 : vector<32x1xf32> to vector<32x128xf32>
    %104 = vector.broadcast %95 : vector<1x128xf32> to vector<32x128xf32>
    %105 = arith.mulf %103, %104 : vector<32x128xf32>
    %106 = arith.addf %101, %105 : vector<32x128xf32>
    %107 = vector.extract_strided_slice %90 {offsets = [0, 2], sizes = [32, 1], strides = [1, 1]} : vector<32x4xf32> to vector<32x1xf32>
    %108 = vector.broadcast %107 : vector<32x1xf32> to vector<32x128xf32>
    %109 = vector.broadcast %69 : vector<1x128xf32> to vector<32x128xf32>
    %110 = arith.mulf %108, %109 : vector<32x128xf32>
    %111 = arith.addf %106, %110 : vector<32x128xf32>
    %112 = vector.extract_strided_slice %90 {offsets = [0, 3], sizes = [32, 1], strides = [1, 1]} : vector<32x4xf32> to vector<32x1xf32>
    %113 = vector.broadcast %112 : vector<32x1xf32> to vector<32x128xf32>
    %114 = vector.broadcast %35 : vector<1x128xf32> to vector<32x128xf32>
    %115 = arith.mulf %113, %114 : vector<32x128xf32>
    %116 = arith.addf %111, %115 : vector<32x128xf32>
    %cst_48 = arith.constant 0.000000e+00 : f32
    %117 = vector.broadcast %cst_48 : f32 to vector<32x128xf32>
    %118 = arith.maximumf %116, %117 : vector<32x128xf32>
    %119 = vector.broadcast %92 : vector<32x1xf32> to vector<32x128xf32>
    %120 = arith.mulf %119, %118 : vector<32x128xf32>
    %cst_49 = arith.constant dense<0.000000e+00> : vector<128xf32>
    %121 = vector.multi_reduction <add>, %120, %cst_49 [0] : vector<32x128xf32> to vector<128xf32>
    %122 = vector.shape_cast %121 : vector<128xf32> to vector<1x128xf32>
    %123 = vector.broadcast %93 : vector<1x1xf32> to vector<1x128xf32>
    %124 = arith.addf %122, %123 : vector<1x128xf32>
    %125 = arith.cmpi eq, %0, %1 : vector<1x128xi32>
    %cst_50 = arith.constant 5.000000e-01 : f32
    %126 = vector.broadcast %cst_50 : f32 to vector<1x128xf32>
    %127 = arith.mulf %126, %124 : vector<1x128xf32>
    %128 = math.exp %127 : vector<1x128xf32>
    %129 = arith.select %125, %128, %124 : vector<1x128xi1>, vector<1x128xf32>
    %130 = arith.cmpi sle, %0, %1 : vector<1x128xi32>
    %131 = arith.extui %130 : vector<1x128xi1> to vector<1x128xi32>
    %132 = arith.sitofp %131 : vector<1x128xi32> to vector<1x128xf32>
    %133 = arith.cmpi sle, %1, %0 : vector<1x128xi32>
    %134 = arith.extui %133 : vector<1x128xi1> to vector<1x128xi32>
    %135 = arith.sitofp %134 : vector<1x128xi32> to vector<1x128xf32>
    %136 = arith.mulf %129, %132 : vector<1x128xf32>
    %137 = vector.broadcast %136 : vector<1x128xf32> to vector<128x128xf32>
    %138 = arith.mulf %9, %137 : vector<128x128xf32>
    %cst_51 = arith.constant dense<0.000000e+00> : vector<128x128xf32>
    %139 = tpu.matmul %138, %21, %cst_51 {dimension_numbers = #tpu.dot_dimension_numbers<[1], [0], [0], [1], [0, 0, 1, 1], [], []>} : vector<128x128xf32>, vector<128x128xf32>, vector<128x128xf32> -> vector<128x128xf32>
    %140 = arith.mulf %129, %135 : vector<1x128xf32>
    %141 = vector.broadcast %140 : vector<1x128xf32> to vector<128x128xf32>
    %142 = arith.mulf %13, %141 : vector<128x128xf32>
    %cst_52 = arith.constant dense<0.000000e+00> : vector<128x128xf32>
    %143 = tpu.matmul %142, %17, %cst_52 {dimension_numbers = #tpu.dot_dimension_numbers<[1], [0], [0], [1], [0, 0, 1, 1], [], []>} : vector<128x128xf32>, vector<128x128xf32>, vector<128x128xf32> -> vector<128x128xf32>
    %144 = arith.addf %139, %143 : vector<128x128xf32>
    %c0_53 = arith.constant 0 : index
    %c0_54 = arith.constant 0 : index
    %145 = vector.load %arg23[%c0_53, %c0_54] : memref<128x128xf32, #tpu.memory_space<vmem>>, vector<128x128xf32>
    tpu.vector_store %arg23[%c0_53, %c0_54], %144 {strides = array<i32>} : memref<128x128xf32, #tpu.memory_space<vmem>>, vector<128x128xf32>,
    return
  }
  func.func @transform_0(%arg0: i32) -> (i32, i32) {
    %c0_i32 = arith.constant 0 : i32
    %c0_i32_0 = arith.constant 0 : i32
    %c0_i32_1 = arith.constant 0 : i32
    return %c0_i32, %c0_i32_0 : i32, i32
  }
  func.func @transform_1(%arg0: i32) -> (i32, i32) {
    %c0_i32 = arith.constant 0 : i32
    %c0_i32_0 = arith.constant 0 : i32
    %c0_i32_1 = arith.constant 0 : i32
    return %c0_i32, %c0_i32_0 : i32, i32
  }
  func.func @transform_2(%arg0: i32) -> (i32, i32) {
    %c0_i32 = arith.constant 0 : i32
    %c0_i32_0 = arith.constant 0 : i32
    %c0_i32_1 = arith.constant 0 : i32
    return %c0_i32, %c0_i32_0 : i32, i32
  }
  func.func @transform_3(%arg0: i32) -> (i32, i32) {
    %c0_i32 = arith.constant 0 : i32
    %c0_i32_0 = arith.constant 0 : i32
    %c0_i32_1 = arith.constant 0 : i32
    return %c0_i32, %c0_i32_0 : i32, i32
  }
  func.func @transform_4(%arg0: i32) -> (i32, i32) {
    %c0_i32 = arith.constant 0 : i32
    %c0_i32_0 = arith.constant 0 : i32
    %c0_i32_1 = arith.constant 0 : i32
    return %c0_i32, %c0_i32_0 : i32, i32
  }
  func.func @transform_5(%arg0: i32) -> (i32, i32) {
    %c0_i32 = arith.constant 0 : i32
    %c0_i32_0 = arith.constant 0 : i32
    %c0_i32_1 = arith.constant 0 : i32
    return %c0_i32, %c0_i32_0 : i32, i32
  }
  func.func @transform_6(%arg0: i32) -> (i32, i32) {
    %c0_i32 = arith.constant 0 : i32
    %c0_i32_0 = arith.constant 0 : i32
    %c0_i32_1 = arith.constant 0 : i32
    return %c0_i32, %c0_i32_0 : i32, i32
  }
  func.func @transform_7(%arg0: i32) -> (i32, i32) {
    %c0_i32 = arith.constant 0 : i32
    %c0_i32_0 = arith.constant 0 : i32
    %c0_i32_1 = arith.constant 0 : i32
    return %c0_i32, %c0_i32_0 : i32, i32
  }
  func.func @transform_8(%arg0: i32) -> (i32, i32) {
    %c0_i32 = arith.constant 0 : i32
    %c0_i32_0 = arith.constant 0 : i32
    %c0_i32_1 = arith.constant 0 : i32
    return %c0_i32, %c0_i32_0 : i32, i32
  }
  func.func @transform_9(%arg0: i32) -> (i32, i32) {
    %c0_i32 = arith.constant 0 : i32
    %c0_i32_0 = arith.constant 0 : i32
    %c0_i32_1 = arith.constant 0 : i32
    return %c0_i32, %c0_i32_0 : i32, i32
  }
  func.func @transform_10(%arg0: i32) -> (i32, i32) {
    %c0_i32 = arith.constant 0 : i32
    %c0_i32_0 = arith.constant 0 : i32
    %c0_i32_1 = arith.constant 0 : i32
    return %c0_i32, %c0_i32_0 : i32, i32
  }
  func.func @transform_11(%arg0: i32) -> (i32, i32) {
    %c0_i32 = arith.constant 0 : i32
    %c0_i32_0 = arith.constant 0 : i32
    %c0_i32_1 = arith.constant 0 : i32
    return %c0_i32, %c0_i32_0 : i32, i32
  }
  func.func @transform_12(%arg0: i32) -> (i32, i32) {
    %c0_i32 = arith.constant 0 : i32
    %c0_i32_0 = arith.constant 0 : i32
    %c0_i32_1 = arith.constant 0 : i32
    return %c0_i32, %c0_i32_0 : i32, i32
  }
  func.func @transform_13(%arg0: i32) -> (i32, i32) {
    %c0_i32 = arith.constant 0 : i32
    %c0_i32_0 = arith.constant 0 : i32
    %c0_i32_1 = arith.constant 0 : i32
    return %c0_i32, %c0_i32_0 : i32, i32
  }
  func.func @transform_14(%arg0: i32) -> (i32, i32) {
    %c0_i32 = arith.constant 0 : i32
    %c0_i32_0 = arith.constant 0 : i32
    %c0_i32_1 = arith.constant 0 : i32
    return %c0_i32, %c0_i32_0 : i32, i32
  }
  func.func @transform_15(%arg0: i32) -> (i32, i32) {
    %c0_i32 = arith.constant 0 : i32
    %c0_i32_0 = arith.constant 0 : i32
    %c0_i32_1 = arith.constant 0 : i32
    return %c0_i32, %c0_i32_0 : i32, i32
  }
  func.func @transform_16(%arg0: i32) -> (i32, i32) {
    %c0_i32 = arith.constant 0 : i32
    %c0_i32_0 = arith.constant 0 : i32
    %c0_i32_1 = arith.constant 0 : i32
    return %c0_i32, %c0_i32_0 : i32, i32
  }
  func.func @transform_17(%arg0: i32) -> (i32, i32) {
    %c0_i32 = arith.constant 0 : i32
    %c0_i32_0 = arith.constant 0 : i32
    %c0_i32_1 = arith.constant 0 : i32
    return %c0_i32, %c0_i32_0 : i32, i32
  }
  func.func @transform_18(%arg0: i32) -> (i32, i32) {
    %c0_i32 = arith.constant 0 : i32
    %c0_i32_0 = arith.constant 0 : i32
    %c0_i32_1 = arith.constant 0 : i32
    return %c0_i32, %c0_i32_0 : i32, i32
  }
  func.func @transform_19(%arg0: i32) -> (i32, i32) {
    %c0_i32 = arith.constant 0 : i32
    %c0_i32_0 = arith.constant 0 : i32
    %c0_i32_1 = arith.constant 0 : i32
    return %c0_i32, %c0_i32_0 : i32, i32
  }
  func.func @transform_20(%arg0: i32) -> (i32, i32) {
    %c0_i32 = arith.constant 0 : i32
    %c0_i32_0 = arith.constant 0 : i32
    %c0_i32_1 = arith.constant 0 : i32
    return %c0_i32, %c0_i32_0 : i32, i32
  }
  func.func @transform_21(%arg0: i32) -> (i32, i32) {
    %c0_i32 = arith.constant 0 : i32
    %c0_i32_0 = arith.constant 0 : i32
    %c0_i32_1 = arith.constant 0 : i32
    return %c0_i32, %c0_i32_0 : i32, i32
  }
  func.func @transform_22(%arg0: i32) -> (i32, i32) {
    %c0_i32 = arith.constant 0 : i32
    %c0_i32_0 = arith.constant 0 : i32
    %c0_i32_1 = arith.constant 0 : i32
    return %c0_i32, %c0_i32_0 : i32, i32
  }
}

</mosaic_0001>

<bundles_post_ra>
// kernel: precondnet_forward.1
= control target key start
LH: loop header
LB: loop body
LE: loop exit
PB: predicated region body
PF: predicated region fallthrough
CT: control target
= control target key end

     0   :  { %v113_v0 = vlaneseq  ;;  %v3098_v1 = vmov 0   ;;  %v1512_v11 = vmov 1.0   ;;  %v3095_v44 = vmov 1   ;;  %s3035_s4 = inlined_call_operand.vmem [shape: s32[128,1], index: 4, kind: input, shape index: {}]   ;;  %s3036_s2 = inlined_call_operand.vmem [shape: s32[1,128], index: 2, kind: input, shape index: {}]   ;;  %s3037_s18 = inlined_call_operand.vmem [shape: f32[32,2], index: 18, kind: input, shape index: {}]   ;;  %s3038_s19 = inlined_call_operand.vmem [shape: f32[32,1], index: 19, kind: input, shape index: {}]   ;;  %s3039_s20 = inlined_call_operand.vmem [shape: f32[32,1], index: 20, kind: input, shape index: {}]   ;;  %s3040_s21 = inlined_call_operand.<no memory space> [shape: f32[1,1], index: 21, kind: input, shape index: {}]   ;;  %s3041_s3 = inlined_call_operand.vmem [shape: s32[1,128], index: 3, kind: input, shape index: {}]   ;;  %s3042_s0 = inlined_call_operand.vmem [shape: f32[1,128], index: 0, kind: input, shape index: {}]   ;;  %s3043_s6 = inlined_call_operand.vmem [shape: f32[32,3], index: 6, kind: input, shape index: {}]   ;;  %s3044_s7 = inlined_call_operand.vmem [shape: f32[32,1], index: 7, kind: input, shape index: {}]   ;;  %s3045_s1 = inlined_call_operand.vmem [shape: f32[1,128], index: 1, kind: input, shape index: {}]   ;;  %s3046_s9 = inlined_call_operand.<no memory space> [shape: f32[1,1], index: 9, kind: input, shape index: {}]   ;;  %s3047_s8 = inlined_call_operand.vmem [shape: f32[32,1], index: 8, kind: input, shape index: {}]   ;;  %s3048_s10 = inlined_call_operand.vmem [shape: f32[32,2], index: 10, kind: input, shape index: {}]   ;;  %s3049_s11 = inlined_call_operand.vmem [shape: f32[32,1], index: 11, kind: input, shape index: {}]   ;;  %s3050_s12 = inlined_call_operand.vmem [shape: f32[32,1], index: 12, kind: input, shape index: {}]   ;;  %s3051_s13 = inlined_call_operand.<no memory space> [shape: f32[1,1], index: 13, kind: input, shape index: {}]   ;;  %s3052_s14 = inlined_call_operand.vmem [shape: f32[32,4], index: 14, kind: input, shape index: {}]   ;;  %s3053_s15 = inlined_call_operand.vmem [shape: f32[32,1], index: 15, kind: input, shape index: {}]   ;;  %s3054_s16 = inlined_call_operand.vmem [shape: f32[32,1], index: 16, kind: input, shape index: {}]   ;;  %s3055_s5 = inlined_call_operand.vmem [shape: s32[128,1], index: 5, kind: input, shape index: {}]   ;;  %s3056_s17 = inlined_call_operand.<no memory space> [shape: f32[1,1], index: 17, kind: input, shape index: {}]   ;;  %s3057_s22 = inlined_call_operand.vmem [shape: f32[128,128], index: 22, kind: output, shape index: {}]  }
   0x1   :  { %3106 = sst [smem:[#allocation9_spill]] %s3035_s4  ;;  %1468 = vset.pattern.permute.xlu2 %v3098_v1  ;;  %1467 = vset.pattern.permute.xlu1 %v3098_v1  ;;  %v477_v36 = vld [vmem:[%s3042_s0] sm:$0x1]  ;;  %v480_v37 = vld [vmem:[%s3043_s6 + $0x8] sm:$0xff]  ;;  %v481_v42 = vld [vmem:[%s3043_s6 + $0x10] sm:$0xff]  ;;  %v27_v45 = vstv %s3046_s9  ;;  %v3096_v47 = vmov 2  }
   0x2   :  { %3107 = sst [smem:[#allocation10_spill]] %s3036_s2  ;;  %1466 = vset.pattern.permute.xlu0 %v3098_v1  ;;  %v1645_v5 = vshrl.u32 %v113_v0, 7  ;;  %v479_v38 = vld [vmem:[%s3043_s6] sm:$0xff]  ;;  %v484_v40 = vld [vmem:[%s3044_s7 + $0x8] sm:$0xff]  ;;  %v482_v43 = vld [vmem:[%s3043_s6 + $0x18] sm:$0xff] }
   0x3   :  { %3108 = sst [smem:[#allocation11_spill]] %s3041_s3  ;;  %v483_v41 = vld [vmem:[%s3044_s7] sm:$0xff]  ;;  %28 = vst [vmem:[#allocation2] sm:$0x1] %v27_v45  ;;  %v485_v46 = vld [vmem:[%s3044_s7 + $0x10] sm:$0xff]  ;;  %v486_v48 = vld [vmem:[%s3044_s7 + $0x18] sm:$0xff] }
   0x4   :  { %s3109_s29 = sld [smem:[#allocation9_spill]]  ;;  %v1653_v7 = vadd.s32 120, %v1645_v5  ;;  %v1656_v8 = vadd.s32 112, %v1645_v5  ;;  %v1659_v9 = vadd.s32 104, %v1645_v5  ;;  %v1678_v13 = vadd.s32 96, %v1645_v5  ;;  %v489_v49 = vld [vmem:[%s3047_s8 + $0x10] sm:$0xff] }
   0x5   :  { %s3110_s24 = sld [smem:[#allocation10_spill]]  ;;  %v1705_v16 = vadd.s32 88, %v1645_v5  ;;  %v1720_v17 = vadd.s32 80, %v1645_v5  ;;  %v1735_v18 = vadd.s32 72, %v1645_v5  ;;  %v1757_v20 = vadd.s32 64, %v1645_v5  ;;  %v488_v50 = vld [vmem:[%s3047_s8 + $0x8] sm:$0xff] }
   0x6   :  { %3111 = vst [vmem:[#allocation6_spill] sm:$0xff] %v1653_v7  ;;  %s3113_s26 = sld [smem:[#allocation11_spill]]  ;;  %v1780_v23 = vadd.s32 56, %v1645_v5  ;;  %v1795_v24 = vadd.s32 48, %v1645_v5  ;;  %v1810_v25 = vadd.s32 40, %v1645_v5  ;;  %v1832_v27 = vadd.s32 32, %v1645_v5 }
   0x7   :  { %3112 = vst [vmem:[#allocation7_spill] sm:$0xff] %v1659_v9  ;;  %v1855_v30 = vadd.s32 24, %v1645_v5  ;;  %v1870_v31 = vadd.s32 16, %v1645_v5  ;;  %v1885_v32 = vadd.s32 8, %v1645_v5  ;;  %v492_v51 = vld [vmem:[%s3048_s10] sm:$0xff]  ;;  %v490_v54 = vld [vmem:[%s3047_s8 + $0x18] sm:$0xff] }
   0x8   :  { %3114 = vst [vmem:[#allocation8_spill] sm:$0xff] %v1832_v27  ;;  %v487_v52 = vld [vmem:[%s3047_s8] sm:$0xff]  ;;  %v494_v55 = vld [vmem:[%s3048_s10 + $0x10] sm:$0xff]  ;;  %v493_v57 = vld [vmem:[%s3048_s10 + $0x8] sm:$0xff] }
   0x9   :  { %v499_v58 = vld [vmem:[%s3049_s11 + $0x18] sm:$0xff]  ;;  %v497_v60 = vld [vmem:[%s3049_s11 + $0x8] sm:$0xff]  ;;  %v496_v63 = vld [vmem:[%s3049_s11] sm:$0xff] }
   0xa   :  { %v85_v2 = vld [vmem:[%s3109_s29 + $0x20] sm:$0xff]  ;;  %v83_v3 = vld [vmem:[%s3109_s29 + $0x10] sm:$0xff]  ;;  %v86_v12 = vld [vmem:[%s3109_s29 + $0x28] sm:$0xff] }
   0xb   :  { %v81_v4 = vld [vmem:[%s3109_s29] sm:$0xff]  ;;  %243 = vperm.xlu2 %1468, %v85_v2   ;;  %237 = vperm.xlu1 %1467, %v83_v3   ;;  %v84_v14 = vld [vmem:[%s3109_s29 + $0x18] sm:$0xff]  ;;  %v82_v15 = vld [vmem:[%s3109_s29 + $0x8] sm:$0xff]  ;;  %v2147_v3 = vand.u32 127, %v113_v0 }
   0xc   :  { %231 = vperm.xlu0 %1466, %v81_v4   ;;  %v1650_v6 = vld [vmem:[%s3110_s24] ss:$0 sm:$0xff]  ;;  %v88_v21 = vld [vmem:[%s3109_s29 + $0x38] sm:$0xff]  ;;  %v87_v22 = vld [vmem:[%s3109_s29 + $0x30] sm:$0xff] }
   0xd   :  { %v1664_v10 = vld [vmem:[%s3113_s26] ss:$0 sm:$0xff]  ;;  %vm3062_vm0 = vcmp.eq.s32.totalorder %v1653_v7, %v1650_v6  ;;  %vm3068_vm1 = vcmp.eq.s32.totalorder %v1656_v8, %v1650_v6  ;;  %vm3061_vm4 = vcmp.eq.s32.totalorder %v1659_v9, %v1650_v6  ;;  %vm3063_vm6 = vcmp.eq.s32.totalorder %v1678_v13, %v1650_v6  ;;  %v92_v26 = vld [vmem:[%s3109_s29 + $0x58] sm:$0xff]  ;;  %v91_v28 = vld [vmem:[%s3109_s29 + $0x50] sm:$0xff] }
   0xe   :  { %1314 = vmatpush.msk.msra.mxu0 %vm3062_vm0, %v1512_v11  ;;  %vm3077_vm2 = vcmp.eq.s32.totalorder %v1653_v7, %v1664_v10  ;;  %1346 = vmatpush.msk.msra.mxu3 %vm3062_vm0, %v1512_v11  ;;  %vm3079_vm3 = vcmp.eq.s32.totalorder %v1656_v8, %v1664_v10  ;;  %vm3080_vm5 = vcmp.eq.s32.totalorder %v1659_v9, %v1664_v10  ;;  %v89_v19 = vld [vmem:[%s3109_s29 + $0x40] sm:$0xff]  ;;  %v90_v29 = vld [vmem:[%s3109_s29 + $0x48] sm:$0xff]  ;;  %v95_v33 = vld [vmem:[%s3109_s29 + $0x70] sm:$0xff] }
   0xf   :  { %1330 = vmatpush.msk.msra.mxu1 %vm3077_vm2, %v1512_v11  ;;  %vm3082_vm7 = vcmp.eq.s32.totalorder %v1678_v13, %v1664_v10  ;;  %vm3064_vm8 = vcmp.eq.s32.totalorder %v1705_v16, %v1650_v6  ;;  %vm3085_vm9 = vcmp.eq.s32.totalorder %v1705_v16, %v1664_v10  ;;  %vm3065_vm10 = vcmp.eq.s32.totalorder %v1720_v17, %v1650_v6  ;;  %v94_v34 = vld [vmem:[%s3109_s29 + $0x68] sm:$0xff]  ;;  %v93_v35 = vld [vmem:[%s3109_s29 + $0x60] sm:$0xff]  ;;  %v96_v39 = vld [vmem:[%s3109_s29 + $0x78] sm:$0xff] }
  0x10   :  { %1315 = vmatpush.msk.msra.mxu0 %vm3068_vm1, %v1512_v11  ;;  %1347 = vmatpush.msk.msra.mxu3 %vm3068_vm1, %v1512_v11  ;;  %vm3066_vm11 = vcmp.eq.s32.totalorder %v1735_v18, %v1650_v6  ;;  %vm3088_vm12 = vcmp.eq.s32.totalorder %v1720_v17, %v1664_v10  ;;  %vm3067_vm13 = vcmp.eq.s32.totalorder %v1757_v20, %v1650_v6  ;;  %v491_v53 = vld [vmem:[#allocation2] sm:$0x1]  ;;  %v503_v2 = vld [vmem:[%s3050_s12 + $0x18] sm:$0xff] }
  0x11   :  { %1331 = vmatpush.msk.msra.mxu1 %vm3079_vm3, %v1512_v11  ;;  %vm3092_vm14 = vcmp.eq.s32.totalorder %v1735_v18, %v1664_v10  ;;  %vm3070_vm15 = vcmp.eq.s32.totalorder %v1780_v23, %v1650_v6  ;;  %vm3071_vm0 = vcmp.eq.s32.totalorder %v1795_v24, %v1650_v6  ;;  %vm3072_vm1 = vcmp.eq.s32.totalorder %v1810_v25, %v1664_v10  ;;  %v837_v7 = vld [vmem:[%s3053_s15 + $0x18] sm:$0xff] }
  0x12   :  { %1316 = vmatpush.msk.msra.mxu0 %vm3061_vm4, %v1512_v11  ;;  %1348 = vmatpush.msk.msra.mxu3 %vm3061_vm4, %v1512_v11  ;;  %vm3078_vm4 = vcmp.eq.s32.totalorder %v1757_v20, %v1664_v10 }
  0x13   :  { %246 = vperm.xlu2 %1468, %v86_v12   ;;  %240 = vperm.xlu1 %1467, %v84_v14   ;;  %v495_v12 = vld [vmem:[%s3048_s10 + $0x18] sm:$0xff]  ;;  %v29_v14 = vstv %s3051_s13 }
  0x14   :  { %234 = vperm.xlu0 %1466, %v82_v15   ;;  %1332 = vmatpush.msk.msra.mxu1 %vm3080_vm5, %v1512_v11  ;;  %30 = vst [vmem:[#allocation3] sm:$0x1] %v29_v14  ;;  %v3093_v15 = vmov 0.0  }
  0x15   :  { %1317 = vmatpush.msk.msra.mxu0 %vm3063_vm6, %v1512_v11  ;;  %1349 = vmatpush.msk.msra.mxu3 %vm3063_vm6, %v1512_v11  ;;  %vm3074_vm6 = vcmp.eq.s32.totalorder %v1810_v25, %v1650_v6 }
  0x16   :  { %1333 = vmatpush.msk.msra.mxu1 %vm3082_vm7, %v1512_v11 }
  0x17   :  { %1318 = vmatpush.msk.msra.mxu0 %vm3064_vm8, %v1512_v11  ;;  %1350 = vmatpush.msk.msra.mxu3 %vm3064_vm8, %v1512_v11  ;;  %vm3069_vm8 = vcmp.eq.s32.totalorder %v1780_v23, %v1664_v10 }
  0x18   :  { %1334 = vmatpush.msk.msra.mxu1 %vm3085_vm9, %v1512_v11 }
  0x19   :  { %1319 = vmatpush.msk.msra.mxu0 %vm3065_vm10, %v1512_v11  ;;  %1351 = vmatpush.msk.msra.mxu3 %vm3065_vm10, %v1512_v11  ;;  %vm3076_vm10 = vcmp.eq.s32.totalorder %v1832_v27, %v1650_v6 }
  0x1a   :  { %1335 = vmatpush.msk.msra.mxu1 %vm3088_vm12, %v1512_v11 }
  0x1b   :  { %255 = vperm.xlu2 %1468, %v89_v19   ;;  %252 = vperm.xlu1 %1467, %v88_v21  }
  0x1c   :  { %249 = vperm.xlu0 %1466, %v87_v22   ;;  %1320 = vmatpush.msk.msra.mxu0 %vm3066_vm11, %v1512_v11  ;;  %v2176_v22 = vld [vmem:[%s3052_s14] sm:$0xff] }
  0x1d   :  { %1336 = vmatpush.msk.msra.mxu1 %vm3092_vm14, %v1512_v11  ;;  %1352 = vmatpush.msk.msra.mxu3 %vm3066_vm11, %v1512_v11  ;;  %vm3073_vm11 = vcmp.eq.s32.totalorder %v1795_v24, %v1664_v10 }
  0x1e   :  { %1321 = vmatpush.msk.msra.mxu0 %vm3067_vm13, %v1512_v11 }
  0x1f   :  { %1337 = vmatpush.msk.msra.mxu1 %vm3078_vm4, %v1512_v11  ;;  %1353 = vmatpush.msk.msra.mxu3 %vm3067_vm13, %v1512_v11  ;;  %vm3081_vm13 = vcmp.eq.s32.totalorder %v1855_v30, %v1650_v6 }
  0x20   :  { %1322 = vmatpush.msk.msra.mxu0 %vm3070_vm15, %v1512_v11 }
  0x21   :  { %1338 = vmatpush.msk.msra.mxu1 %vm3069_vm8, %v1512_v11  ;;  %1354 = vmatpush.msk.msra.mxu3 %vm3070_vm15, %v1512_v11  ;;  %vm3084_vm8 = vcmp.eq.s32.totalorder %v1870_v31, %v1650_v6  ;;  %vm3087_vm15 = vcmp.eq.s32.totalorder %v1885_v32, %v1650_v6 }
  0x22   :  { %1323 = vmatpush.msk.msra.mxu0 %vm3071_vm0, %v1512_v11 }
  0x23   :  { %264 = vperm.xlu2 %1468, %v92_v26   ;;  %261 = vperm.xlu1 %1467, %v91_v28  }
  0x24   :  { %258 = vperm.xlu0 %1466, %v90_v29   ;;  %1324 = vmatpush.msk.msra.mxu0 %vm3074_vm6, %v1512_v11 }
  0x25   :  { %1339 = vmatpush.msk.msra.mxu1 %vm3073_vm11, %v1512_v11  ;;  %1355 = vmatpush.msk.msra.mxu3 %vm3071_vm0, %v1512_v11  ;;  %vm3075_vm0 = vcmp.eq.s32.totalorder %v1832_v27, %v1664_v10  ;;  %vm3083_vm11 = vcmp.eq.s32.totalorder %v1855_v30, %v1664_v10 }
  0x26   :  { %1325 = vmatpush.msk.msra.mxu0 %vm3076_vm10, %v1512_v11 }
  0x27   :  { %1340 = vmatpush.msk.msra.mxu1 %vm3072_vm1, %v1512_v11  ;;  %1356 = vmatpush.msk.msra.mxu3 %vm3074_vm6, %v1512_v11  ;;  %vm3091_vm1 = vcmp.eq.s32.totalorder %v1645_v5, %v1650_v6  ;;  %vm3086_vm6 = vcmp.eq.s32.totalorder %v1870_v31, %v1664_v10 }
  0x28   :  { %1326 = vmatpush.msk.msra.mxu0 %vm3081_vm13, %v1512_v11 }
  0x29   :  { %1341 = vmatpush.msk.msra.mxu1 %vm3075_vm0, %v1512_v11  ;;  %1357 = vmatpush.msk.msra.mxu3 %vm3076_vm10, %v1512_v11  ;;  %vm3089_vm0 = vcmp.eq.s32.totalorder %v1885_v32, %v1664_v10  ;;  %vm3090_vm10 = vcmp.eq.s32.totalorder %v1645_v5, %v1664_v10 }
  0x2a   :  { %1327 = vmatpush.msk.msra.mxu0 %vm3084_vm8, %v1512_v11 }
  0x2b   :  { %273 = vperm.xlu2 %1468, %v95_v33   ;;  %270 = vperm.xlu1 %1467, %v94_v34  }
  0x2c   :  { %267 = vperm.xlu0 %1466, %v93_v35   ;;  %1328 = vmatpush.msk.msra.mxu0 %vm3087_vm15, %v1512_v11 }
  0x2d   :  { %1342 = vmatpush.msk.msra.mxu1 %vm3083_vm11, %v1512_v11  ;;  %1358 = vmatpush.msk.msra.mxu3 %vm3081_vm13, %v1512_v11 }
  0x2e   :  { %1329 = vmatpush.msk.msra.mxu0 %vm3091_vm1, %v1512_v11 }
  0x2f   :  { %521 = vmatmul.f32.vlgmr.msra.gmra.mxu0 %v477_v36  ;;  %1343 = vmatpush.msk.msra.mxu1 %vm3086_vm6, %v1512_v11 }
  0x30   :  { %1362 = vmatpush.msk.msrb.mxu0 %vm3077_vm2, %v1512_v11  ;;  %1359 = vmatpush.msk.msra.mxu3 %vm3084_vm8, %v1512_v11  ;;  %vm3115_vm2 = vcmp.eq.s32.totalorder %v1780_v23, %v1664_v10 }
  0x31   :  { %1344 = vmatpush.msk.msra.mxu1 %vm3089_vm0, %v1512_v11 }
  0x32   :  { %1360 = vmatpush.msk.msra.mxu3 %vm3087_vm15, %v1512_v11  ;;  %1363 = vmatpush.msk.msrb.mxu0 %vm3079_vm3, %v1512_v11  ;;  %vm3117_vm3 = vcmp.eq.s32.totalorder %v1810_v25, %v1664_v10 }
  0x33   :  { %552 = vperm.xlu2 %1468, %v480_v37   ;;  %547 = vperm.xlu1 %1467, %v479_v38  }
  0x34   :  { %276 = vperm.xlu0 %1466, %v96_v39   ;;  %1345 = vmatpush.msk.msra.mxu1 %vm3090_vm10, %v1512_v11 }
  0x35   :  { %541 = vmatmul.f32.vlgmr.msra.gmra.mxu1 %v477_v36  ;;  %1361 = vmatpush.msk.msra.mxu3 %vm3091_vm1, %v1512_v11 }
  0x36   :  { %1364 = vmatpush.msk.msrb.mxu0 %vm3080_vm5, %v1512_v11 }
  0x38   :  { %1365 = vmatpush.msk.msrb.mxu0 %vm3082_vm7, %v1512_v11 }
  0x3a   :  { %1366 = vmatpush.msk.msrb.mxu0 %vm3085_vm9, %v1512_v11 }
  0x3b   :  { %577 = vperm.xlu2 %1468, %v484_v40   ;;  %572 = vperm.xlu1 %1467, %v483_v41  }
  0x3c   :  { %557 = vperm.xlu0 %1466, %v481_v42   ;;  %1367 = vmatpush.msk.msrb.mxu0 %vm3088_vm12, %v1512_v11 }
  0x3e   :  { %1368 = vmatpush.msk.msrb.mxu0 %vm3092_vm14, %v1512_v11 }
  0x40   :  { %1369 = vmatpush.msk.msrb.mxu0 %vm3078_vm4, %v1512_v11  ;;  %vm3116_vm4 = vcmp.eq.s32.totalorder %v1795_v24, %v1664_v10 }
  0x42   :  { %1370 = vmatpush.msk.msrb.mxu0 %vm3115_vm2, %v1512_v11  ;;  %vm3118_vm2 = vcmp.eq.s32.totalorder %v1832_v27, %v1664_v10 }
  0x43   :  { %562 = vperm.xlu2 %1468, %v482_v43   ;;  %1470 = vset.pattern.permute.xlu1 %v3095_v44 }
  0x44   :  { %1469 = vset.pattern.permute.xlu0 %v3095_v44  ;;  %599 = vperm.xlu1 %1470, %v480_v37  }
  0x45   :  { %595 = vperm.xlu0 %1469, %v479_v38   ;;  %1371 = vmatpush.msk.msrb.mxu0 %vm3116_vm4, %v1512_v11 }
  0x47   :  { %1372 = vmatpush.msk.msrb.mxu0 %vm3117_vm3, %v1512_v11 }
  0x49   :  { %1373 = vmatpush.msk.msrb.mxu0 %vm3118_vm2, %v1512_v11 }
  0x4b   :  { %1472 = vset.pattern.permute.xlu2 %v3095_v44  ;;  %1374 = vmatpush.msk.msrb.mxu0 %vm3083_vm11, %v1512_v11 }
  0x4c   :  { %603 = vperm.xlu2 %1472, %v481_v42   ;;  %1471 = vset.pattern.permute.xlu1 %v3098_v1 }
  0x4d   :  { %1473 = vset.pattern.permute.xlu0 %v3096_v47  ;;  %582 = vperm.xlu1 %1471, %v485_v46  }
  0x4e   :  { %620 = vperm.xlu0 %1473, %v479_v38   ;;  %1375 = vmatpush.msk.msrb.mxu0 %vm3086_vm6, %v1512_v11 }
  0x50   :  { %1376 = vmatpush.msk.msrb.mxu0 %vm3089_vm0, %v1512_v11 }
  0x52   :  { %1377 = vmatpush.msk.msrb.mxu0 %vm3090_vm10, %v1512_v11 }
  0x54   :  { %1475 = vset.pattern.permute.xlu2 %v3098_v1 }
  0x55   :  { %587 = vperm.xlu2 %1475, %v486_v48   ;;  %1474 = vset.pattern.permute.xlu1 %v3096_v47 }
  0x56   :  { %632 = vperm.xlu0 %1473, %v482_v43   ;;  %624 = vperm.xlu1 %1474, %v480_v37  }
  0x5d   :  { %1477 = vset.pattern.permute.xlu2 %v3096_v47 }
  0x5e   :  { %1480 = vset.pattern.permute.xlu0 %v3098_v1  ;;  %628 = vperm.xlu2 %1477, %v481_v42   ;;  %v498_v42 = vld [vmem:[%s3049_s11 + $0x10] sm:$0xff] }
  0x5f   :  { %1476 = vset.pattern.permute.xlu1 %v3095_v44  ;;  %662 = vperm.xlu0 %1480, %v489_v49  }
  0x60   :  { %607 = vperm.xlu1 %1476, %v482_v43  }
  0x65   :  { %v2122_v56 = vpop.permute.xlu2 %243 }
  0x66   :  { %1479 = vset.pattern.permute.xlu2 %v3098_v1  ;;  %vm282_vm13 = vcmp.eq.s32.totalorder %v2147_v3, %v2122_v56 }
  0x67   :  { %1481 = vset.pattern.permute.xlu0 %v3095_v44  ;;  %657 = vperm.xlu2 %1479, %v488_v50   ;;  %v2215_v37 = vsel %vm282_vm13, 1.0, %v3093_v15 }
  0x68   :  { %1478 = vset.pattern.permute.xlu1 %v3098_v1  ;;  %762 = vperm.xlu0 %1481, %v492_v51  }
  0x69   :  { %652 = vperm.xlu1 %1478, %v487_v52  }
  0x6d   :  { %v2131_v59 = vpop.permute.xlu2 %246 }
  0x6e   :  { %vm283_vm7 = vcmp.eq.s32.totalorder %v2147_v3, %v2131_v59 }
  0x6f   :  { %685 = vperm.xlu2 %1479, %v491_v53   ;;  %v2229_v41 = vsel %vm283_vm7, 1.0, %v3093_v15  ;;  %v500_v53 = vld [vmem:[%s3050_s12] sm:$0xff] }
  0x70   :  { %1482 = vset.pattern.permute.xlu0 %v3098_v1 }
  0x71   :  { %667 = vperm.xlu1 %1478, %v490_v54   ;;  %722 = vperm.xlu0 %1482, %v494_v55  }
  0x75   :  { %v2149_v4 = vpop.permute.xlu2 %255 }
  0x76   :  { %vm286_vm9 = vcmp.eq.s32.totalorder %v2147_v3, %v2149_v4  ;;  %v2411_v4 = vld [vmem:[%s3052_s14 + $0x8] sm:$0xff] }
  0x77   :  { %717 = vperm.xlu2 %1479, %v493_v57   ;;  %v2258_v50 = vsel %vm286_vm9, 1.0, %v3093_v15 }
  0x79   :  { %712 = vperm.xlu1 %1478, %v492_v51   ;;  %754 = vperm.xlu0 %1482, %v499_v58  }
  0x7d   :  { %v2136_v61 = vpop.permute.xlu1 %237  ;;  %v2208_v35 = vpop.permute.xlu2 %264 }
  0x7e   :  { %v2138_v62 = vpop.permute.xlu0 %231  ;;  %vm280_vm4 = vcmp.eq.s32.totalorder %v2147_v3, %v2136_v61  ;;  %vm289_vm12 = vcmp.eq.s32.totalorder %v2147_v3, %v2208_v35 }
  0x7f   :  { %744 = vperm.xlu2 %1479, %v497_v60   ;;  %vm278_vm3 = vcmp.eq.s32.totalorder %v2147_v3, %v2138_v62  ;;  %v2194_v29 = vsel %vm280_vm4, 1.0, %v3093_v15  ;;  %v3119_v62 = vmov 0  }
  0x80   :  { %v2163_v0 = vsel %vm278_vm3, 1.0, %v3093_v15 }
  0x81   :  { %739 = vperm.xlu1 %1478, %v496_v63   ;;  %807 = vperm.xlu0 %1482, %v503_v2   ;;  %v2294_v2 = vsel %vm289_vm12, 1.0, %v3093_v15 }
  0x85   :  { %v2165_v19 = vpop.permute.xlu1 %240 }
  0x86   :  { %v2167_v21 = vpop.permute.xlu0 %234  ;;  %vm281_vm5 = vcmp.eq.s32.totalorder %v2147_v3, %v2165_v19  ;;  %v836_v19 = vld [vmem:[%s3053_s15 + $0x10] sm:$0xff] }
  0x87   :  { %vm279_vm2 = vcmp.eq.s32.totalorder %v2147_v3, %v2167_v21  ;;  %727 = vperm.xlu2 %1479, %v495_v12   ;;  %v2204_v34 = vsel %vm281_vm5, 1.0, %v3093_v15 }
  0x88   :  { %v2182_v26 = vsel %vm279_vm2, 1.0, %v3093_v15 }
  0x89   :  { %v422_v28 = vadd.f32 %v2182_v26, %v2163_v0  ;;  %1483 = vset.pattern.permute.xlu1 %v3095_v44  ;;  %1492 = vset.pattern.permute.xlu0 %v3096_v47 }
  0x8a   :  { %766 = vperm.xlu1 %1483, %v493_v57   ;;  %958 = vperm.xlu0 %1492, %v2176_v22  }
  0x8b   :  { %v423_v33 = vadd.f32 %v2194_v29, %v422_v28 }
  0x8d   :  { %v424_v36 = vadd.f32 %v2204_v34, %v423_v33  ;;  %v2217_v38 = vpop.permute.xlu1 %252  ;;  %v502_v33 = vld [vmem:[%s3050_s12 + $0x10] sm:$0xff] }
  0x8e   :  { %v2219_v39 = vpop.permute.xlu0 %249  ;;  %vm285_vm8 = vcmp.eq.s32.totalorder %v2147_v3, %v2217_v38 }
  0x8f   :  { %v425_v40 = vadd.f32 %v2215_v37, %v424_v36  ;;  %vm284_vm11 = vcmp.eq.s32.totalorder %v2147_v3, %v2219_v39  ;;  %1485 = vset.pattern.permute.xlu2 %v3095_v44  ;;  %v2251_v48 = vsel %vm285_vm8, 1.0, %v3093_v15 }
  0x90   :  { %770 = vperm.xlu2 %1485, %v494_v55   ;;  %v2241_v45 = vsel %vm284_vm11, 1.0, %v3093_v15  ;;  %v274_v55 = vpop.permute.xlu2 %273 }
  0x91   :  { %v426_v43 = vadd.f32 %v2229_v41, %v425_v40  ;;  %vm292_vm1 = vcmp.eq.s32.totalorder %v2147_v3, %v274_v55 }
  0x92   :  { %1484 = vset.pattern.permute.xlu1 %v3098_v1 }
  0x93   :  { %v427_v46 = vadd.f32 %v2241_v45, %v426_v43  ;;  %749 = vperm.xlu1 %1484, %v498_v42  }
  0x95   :  { %v428_v49 = vadd.f32 %v2251_v48, %v427_v46  ;;  %v2260_v51 = vpop.permute.xlu1 %261  ;;  %v501_v46 = vld [vmem:[%s3050_s12 + $0x8] sm:$0xff] }
  0x96   :  { %v2262_v52 = vpop.permute.xlu0 %258  ;;  %vm288_vm6 = vcmp.eq.s32.totalorder %v2147_v3, %v2260_v51 }
  0x97   :  { %v429_v54 = vadd.f32 %v2258_v50, %v428_v49  ;;  %vm287_vm15 = vcmp.eq.s32.totalorder %v2147_v3, %v2262_v52  ;;  %v2284_v60 = vsel %vm288_vm6, 1.0, %v3093_v15 }
  0x98   :  { %v2276_v57 = vsel %vm287_vm15, 1.0, %v3093_v15  ;;  %1487 = vset.pattern.permute.xlu2 %v3098_v1  ;;  %v2308_v42 = vpop.permute.xlu2 %552 }
  0x99   :  { %v430_v58 = vadd.f32 %v2276_v57, %v429_v54  ;;  %792 = vperm.xlu2 %1487, %v500_v53   ;;  %v2322_v53 = vsel %vm292_vm1, 1.0, %v3093_v15 }
  0x9b   :  { %v431_v63 = vadd.f32 %v2284_v60, %v430_v58  ;;  %1486 = vset.pattern.permute.xlu1 %v3095_v44 }
  0x9c   :  { %774 = vperm.xlu1 %1486, %v495_v12  }
  0x9d   :  { %v271_v14 = vpop.permute.xlu1 %270  ;;  %v432_v36 = vadd.f32 %v2294_v2, %v431_v63 }
  0x9e   :  { %v268_v28 = vpop.permute.xlu0 %267  ;;  %vm291_vm0 = vcmp.eq.s32.totalorder %v2147_v3, %v271_v14 }
  0x9f   :  { %vm290_vm10 = vcmp.eq.s32.totalorder %v2147_v3, %v268_v28  ;;  %v2313_v43 = vsel %vm291_vm0, 1.0, %v3093_v15  ;;  %v2375_v28 = vld [vmem:[%s3052_s14 + $0x10] sm:$0xff] }
  0xa0   :  { %v2305_v12 = vsel %vm290_vm10, 1.0, %v3093_v15 }
  0xa1   :  { %v433_v40 = vadd.f32 %v2305_v12, %v432_v36  ;;  %802 = vperm.xlu2 %1487, %v502_v33   ;;  %v504_v36 = vld [vmem:[#allocation3] sm:$0x1] }
  0xa3   :  { %v434_v49 = vadd.f32 %v2313_v43, %v433_v40 }
  0xa4   :  { %1488 = vset.pattern.permute.xlu1 %v3098_v1 }
  0xa5   :  { %797 = vperm.xlu1 %1488, %v501_v46   ;;  %v2324_v54 = vpop.permute.xlu1 %547  ;;  %v435_v63 = vadd.f32 %v2322_v53, %v434_v49  ;;  %v2337_v46 = vpop.permute.xlu2 %577 }
  0xa6   :  { %v277_v58 = vpop.permute.xlu0 %276 }
  0xa7   :  { %vm293_vm14 = vcmp.eq.s32.totalorder %v2147_v3, %v277_v58 }
  0xa8   :  { %1380 = vmatpush.msk.msrb.mxu1 %vm293_vm14, %v1512_v11  ;;  %1412 = vmatpush.msk.msrb.mxu3 %vm293_vm14, %v1512_v11  ;;  %v2331_v55 = vsel %vm293_vm14, 1.0, %v3093_v15 }
  0xa9   :  { %885 = vperm.xlu2 %1487, %v2176_v22   ;;  %v436_v33 = vadd.f32 %v2331_v55, %v435_v63  ;;  %v834_v63 = vld [vmem:[%s3053_s15] sm:$0xff] }
  0xaa   :  { %1381 = vmatpush.msk.msrb.mxu1 %vm292_vm1, %v1512_v11  ;;  %1413 = vmatpush.msk.msrb.mxu3 %vm292_vm1, %v1512_v11 }
  0xab   :  { %v437_v40 = vrot.slane %v436_v33, 4 }
  0xac   :  { %1382 = vmatpush.msk.msrb.mxu1 %vm291_vm0, %v1512_v11  ;;  %1414 = vmatpush.msk.msrb.mxu3 %vm291_vm0, %v1512_v11 }
  0xad   :  { %825 = vperm.xlu1 %1488, %v504_v36   ;;  %v438_v49 = vadd.f32 %v437_v40, %v436_v33  ;;  %v2345_v58 = vpop.permute.xlu1 %572  ;;  %v2386_v35 = vpop.permute.xlu2 %562 }
  0xae   :  { %1383 = vmatpush.msk.msrb.mxu1 %vm290_vm10, %v1512_v11  ;;  %1415 = vmatpush.msk.msrb.mxu3 %vm290_vm10, %v1512_v11  ;;  %v2396_v51 = vpop.permute.xlu0 %557 }
  0xaf   :  { %v439_v15 = vrot.slane %v438_v49, 2 }
  0xb0   :  { %1384 = vmatpush.msk.msrb.mxu1 %vm289_vm12, %v1512_v11  ;;  %1416 = vmatpush.msk.msrb.mxu3 %vm289_vm12, %v1512_v11 }
  0xb1   :  { %910 = vperm.xlu2 %1487, %v834_v63   ;;  %v440_v14 = vadd.f32 %v439_v15, %v438_v49 }
  0xb2   :  { %1385 = vmatpush.msk.msrb.mxu1 %vm288_vm6, %v1512_v11  ;;  %1417 = vmatpush.msk.msrb.mxu3 %vm288_vm6, %v1512_v11  ;;  %v542_v47 = vpop.f32.mrf.mxu1 }
  0xb3   :  { %v441_v33 = vrot.slane %v440_v14, 1 }
  0xb4   :  { %1386 = vmatpush.msk.msrb.mxu1 %vm287_vm15, %v1512_v11  ;;  %1418 = vmatpush.msk.msrb.mxu3 %vm287_vm15, %v1512_v11 }
  0xb5   :  { %895 = vperm.xlu1 %1488, %v2375_v28   ;;  %v442_v15 = vadd.f32 %v441_v33, %v440_v14  ;;  %v2432_v38 = vpop.permute.xlu2 %603 }
  0xb6   :  { %1387 = vmatpush.msk.msrb.mxu1 %vm286_vm9, %v1512_v11  ;;  %1419 = vmatpush.msk.msrb.mxu3 %vm286_vm9, %v1512_v11  ;;  %v2398_v36 = vpop.permute.xlu1 %599 }
  0xb7   :  { %v444_v52 = vmax.f32 %v442_v15, 1.0  ;;  %v596_v49 = vpop.permute.xlu0 %595 }
  0xb8   :  { %1388 = vmatpush.msk.msrb.mxu1 %vm285_vm8, %v1512_v11  ;;  %1420 = vmatpush.msk.msrb.mxu3 %vm285_vm8, %v1512_v11 }
  0xb9   :  { %1490 = vset.pattern.permute.xlu2 %v3095_v44  ;;  %1507 = vrcp.f32 %v444_v52  ;;  %v456_v63 = vand.u32 2147483648, %v444_v52  ;;  %v454_v33 = vand.u32 2147483647, %v444_v52  ;;  %vm450_vm1 = vweird.f32 %v444_v52 }
  0xba   :  { %1389 = vmatpush.msk.msrb.mxu1 %vm284_vm11, %v1512_v11  ;;  %1421 = vmatpush.msk.msrb.mxu3 %vm284_vm11, %v1512_v11 }
  0xbb   :  { %937 = vperm.xlu2 %1490, %v2411_v4   ;;  %vm455_vm6 = vcmp.eq.f32.partialorder %v454_v33, 8.507059e+37 }
  0xbc   :  { %1390 = vmatpush.msk.msrb.mxu1 %vm283_vm7, %v1512_v11  ;;  %1422 = vmatpush.msk.msrb.mxu3 %vm283_vm7, %v1512_v11  ;;  %vm443_vm7 = vcmp.gt.f32.partialorder %v442_v15, 0.0 }
  0xbd   :  { %1489 = vset.pattern.permute.xlu1 %v3095_v44  ;;  %v588_v21 = vpop.permute.xlu2 %587 }
  0xbe   :  { %933 = vperm.xlu1 %1489, %v2176_v22   ;;  %1391 = vmatpush.msk.msrb.mxu1 %vm282_vm13, %v1512_v11 }
  0xbf   :  { %v1508_v39 = vpop.eup %1507  ;;  %1423 = vmatpush.msk.msrb.mxu3 %vm282_vm13, %v1512_v11  ;;  %v2443_v40 = vpop.permute.xlu1 %582 }
  0xc0   :  { %1392 = vmatpush.msk.msrb.mxu1 %vm281_vm5, %v1512_v11  ;;  %v446_v59 = vmul.f32 %v1508_v39, %v444_v52  ;;  %vm451_vm0 = vweird.f32 %v1508_v39  ;;  %v621_v27 = vpop.permute.xlu0 %620 }
  0xc1   :  { %1424 = vmatpush.msk.msrb.mxu3 %vm281_vm5, %v1512_v11  ;;  %vm452_vm5 = vmor %vm450_vm1, %vm451_vm0 }
  0xc2   :  { %1393 = vmatpush.msk.msrb.mxu1 %vm280_vm4, %v1512_v11  ;;  %v447_v56 = vsub.f32 1.0, %v446_v59  ;;  %v522_v59 = vpop.f32.mrf.mxu0 }
  0xc3   :  { %1425 = vmatpush.msk.msrb.mxu3 %vm280_vm4, %v1512_v11  ;;  %941 = vperm.xlu2 %1490, %v2375_v28  }
  0xc4   :  { %1394 = vmatpush.msk.msrb.mxu1 %vm279_vm2, %v1512_v11  ;;  %v448_v14 = vmul.f32 %v1508_v39, %v447_v56  ;;  %v457_v56 = vor.u32 1.1754944e-38, %v456_v63 }
  0xc5   :  { %1426 = vmatpush.msk.msrb.mxu3 %vm279_vm2, %v1512_v11 }
  0xc6   :  { %1491 = vset.pattern.permute.xlu1 %v3098_v1  ;;  %1395 = vmatpush.msk.msrb.mxu1 %vm278_vm3, %v1512_v11  ;;  %v449_v61 = vadd.f32 %v1508_v39, %v448_v14  ;;  %v565_v14 = vperm.slane %v522_v59, 0 }
  0xc7   :  { %1427 = vmatpush.msk.msrb.mxu3 %vm278_vm3, %v1512_v11  ;;  %920 = vperm.xlu1 %1491, %v836_v19   ;;  %v610_v19 = vperm.slane %v542_v47, 0 }
  0xc8   :  { %v453_v44 = vsel %vm452_vm5, %v1508_v39, %v449_v61  ;;  %v625_v1 = vpop.permute.xlu1 %624  ;;  %v566_v33 = vmul.f32 %v565_v14, %v2324_v54  ;;  %v567_v15 = vmul.f32 %v565_v14, %v2308_v42  ;;  %v3120_v61 = vmov 2  }
  0xc9   :  { %v458_v52 = vsel %vm455_vm6, %v457_v56, %v453_v44  ;;  %v2497_v44 = vld [vmem:[%s3045_s1] ss:$0 sm:$0xff] }
  0xca   :  { %v2485_v9 = vsel %vm443_vm7, %v458_v52, 0.0  ;;  %v590_v54 = vadd.f32 %v2345_v58, %v566_v33  ;;  %v591_v59 = vadd.f32 %v2337_v46, %v567_v15  ;;  %v638_v56 = vmul.f32 %v2497_v44, %v621_v27  ;;  %v633_v46 = vpop.permute.xlu0 %632  ;;  %v2526_v15 = vld [vmem:[%s3052_s14 + $0x18] sm:$0xff] }
  0xcb   :  { %1494 = vset.pattern.permute.xlu2 %v3119_v62  ;;  %v476_v63 = vmul.f32 %v2331_v55, %v2485_v9  ;;  %v475_v39 = vmul.f32 %v2322_v53, %v2485_v9  ;;  %v474_v47 = vmul.f32 %v2313_v43, %v2485_v9  ;;  %v611_v55 = vmul.f32 %v610_v19, %v596_v49  ;;  %v629_v49 = vpop.permute.xlu2 %628 }
  0xcc   :  { %925 = vperm.xlu2 %1494, %v837_v7   ;;  %v612_v7 = vmul.f32 %v610_v19, %v2398_v36  ;;  %v568_v53 = vmul.f32 %v565_v14, %v2396_v51  ;;  %v473_v42 = vmul.f32 %v2305_v12, %v2485_v9  ;;  %v639_v52 = vmul.f32 %v2497_v44, %v625_v1 }
  0xcd   :  { %690 = vmatpush.msra.mxu2 %v476_v63  ;;  %v569_v36 = vmul.f32 %v565_v14, %v2386_v35  ;;  %v472_v51 = vmul.f32 %v2294_v2, %v2485_v9  ;;  %v613_v58 = vmul.f32 %v610_v19, %v2432_v38  ;;  %v471_v1 = vmul.f32 %v2284_v60, %v2485_v9 }
  0xce   :  { %v616_v63 = vadd.f32 %v612_v7, %v591_v59  ;;  %v592_v12 = vadd.f32 %v2443_v40, %v568_v53  ;;  %v470_v2 = vmul.f32 %v2276_v57, %v2485_v9  ;;  %v640_v40 = vmul.f32 %v2497_v44, %v629_v49 }
  0xcf   :  { %1493 = vset.pattern.permute.xlu1 %v3120_v61  ;;  %691 = vmatpush.msra.mxu2 %v475_v39  ;;  %v615_v39 = vadd.f32 %v611_v55, %v590_v54  ;;  %v593_v33 = vadd.f32 %v588_v21, %v569_v36  ;;  %v469_v60 = vmul.f32 %v2258_v50, %v2485_v9 }
  0xd0   :  { %962 = vperm.xlu1 %1493, %v2411_v4   ;;  %v643_v35 = vadd.f32 %v639_v52, %v616_v63  ;;  %v617_v38 = vadd.f32 %v613_v58, %v592_v12  ;;  %v468_v7 = vmul.f32 %v2251_v48, %v2485_v9  ;;  %v641_v55 = vmul.f32 %v2497_v44, %v633_v46 }
  0xd1   :  { %692 = vmatpush.msra.mxu2 %v474_v47  ;;  %v642_v27 = vadd.f32 %v638_v56, %v615_v39  ;;  %v467_v50 = vmul.f32 %v2241_v45, %v2485_v9  ;;  %v465_v49 = vmul.f32 %v2215_v37, %v2485_v9  ;;  %v464_v45 = vmul.f32 %v2204_v34, %v2485_v9 }
  0xd2   :  { %v608_v43 = vpop.permute.xlu1 %607  ;;  %v644_v53 = vadd.f32 %v640_v40, %v617_v38  ;;  %v663_v52 = vpop.permute.xlu0 %662  ;;  %v463_v46 = vmul.f32 %v2194_v29, %v2485_v9  ;;  %v461_v37 = vmul.f32 %v2163_v0, %v2485_v9  ;;  %v1516_v29 = vmov 3  }
  0xd3   :  { %693 = vmatpush.msra.mxu2 %v473_v42  ;;  %v614_v14 = vmul.f32 %v610_v19, %v608_v43  ;;  %v647_v19 = vmax.f32 %v643_v35, 0.0  ;;  %v646_v57 = vmax.f32 %v642_v27, 0.0  ;;  %v658_v54 = vpop.permute.xlu2 %657  ;;  %v466_v43 = vmul.f32 %v2229_v41, %v2485_v9  ;;  %1497 = vset.pattern.permute.xlu0 %v1516_v29 }
  0xd4   :  { %1496 = vset.pattern.permute.xlu2 %v3120_v61  ;;  %v3121_v61 = vmov 1   ;;  %v648_v36 = vmax.f32 %v644_v53, 0.0  ;;  %982 = vperm.xlu0 %1497, %v2176_v22   ;;  %v835_v22 = vld [vmem:[%s3053_s15 + $0x8] sm:$0xff] }
  0xd5   :  { %966 = vperm.xlu2 %1496, %v2375_v28   ;;  %694 = vmatpush.msra.mxu2 %v472_v51  ;;  %v618_v47 = vadd.f32 %v614_v14, %v593_v33  ;;  %v671_v59 = vmul.f32 %v658_v54, %v647_v19  ;;  %v841_v19 = vld [vmem:[%s3054_s16 + $0x18] sm:$0xff] }
  0xd6   :  { %v672_v51 = vmul.f32 %v663_v52, %v648_v36  ;;  %v106_v52 = vld [vmem:[%s3055_s5 + $0x48] sm:$0xff]  ;;  %v105_v36 = vld [vmem:[%s3055_s5 + $0x40] sm:$0xff] }
  0xd7   :  { %695 = vmatpush.msra.mxu2 %v471_v1  ;;  %v645_v56 = vadd.f32 %v641_v55, %v618_v47  ;;  %v462_v1 = vmul.f32 %v2182_v26, %v2485_v9  ;;  %v111_v55 = vld [vmem:[%s3055_s5 + $0x70] sm:$0xff] }
  0xd8   :  { %1495 = vset.pattern.permute.xlu1 %v3121_v61 }
  0xd9   :  { %696 = vmatpush.msra.mxu2 %v470_v2  ;;  %945 = vperm.xlu1 %1495, %v2526_v15   ;;  %v649_v63 = vmax.f32 %v645_v56, 0.0 }
  0xdb   :  { %v653_v21 = vpop.permute.xlu1 %652  ;;  %697 = vmatpush.msra.mxu2 %v469_v60  ;;  %v686_v33 = vpop.permute.xlu2 %685  ;;  %v839_v60 = vld [vmem:[%s3054_s16 + $0x8] sm:$0xff] }
  0xdc   :  { %v670_v42 = vmul.f32 %v653_v21, %v646_v57  ;;  %v688_v40 = vperm.slane %v686_v33, 0  ;;  %1498 = vset.pattern.permute.xlu0 %v3119_v62  ;;  %v838_v57 = vld [vmem:[%s3054_s16] sm:$0xff] }
  0xdd   :  { %970 = vperm.xlu2 %1496, %v2526_v15   ;;  %698 = vmatpush.msra.mxu2 %v468_v7 }
  0xde   :  { %v674_v48 = vadd.f32 %v671_v59, %v670_v42  ;;  %890 = vperm.xlu0 %1498, %v2411_v4   ;;  %v108_v42 = vld [vmem:[%s3055_s5 + $0x58] sm:$0xff]  ;;  %v840_v59 = vld [vmem:[%s3054_s16 + $0x10] sm:$0xff] }
  0xdf   :  { %699 = vmatpush.msra.mxu2 %v467_v50 }
  0xe0   :  { %v675_v58 = vadd.f32 %v674_v48, %v672_v51  ;;  %v31_v48 = vstv %s3056_s17  ;;  %v112_v51 = vld [vmem:[%s3055_s5 + $0x78] sm:$0xff] }
  0xe1   :  { %700 = vmatpush.msra.mxu2 %v466_v43  ;;  %1499 = vset.pattern.permute.xlu1 %v1516_v29  ;;  %32 = vst [vmem:[#allocation4] sm:$0x1] %v31_v48 }
  0xe2   :  { %986 = vperm.xlu1 %1499, %v2411_v4  }
  0xe3   :  { %v668_v39 = vpop.permute.xlu1 %667  ;;  %701 = vmatpush.msra.mxu2 %v465_v49  ;;  %v718_v0 = vpop.permute.xlu2 %717 }
  0xe4   :  { %v673_v12 = vmul.f32 %v668_v39, %v649_v63  ;;  %v763_v49 = vpop.permute.xlu0 %762  ;;  %v103_v63 = vld [vmem:[%s3055_s5 + $0x30] sm:$0xff]  ;;  %v102_v39 = vld [vmem:[%s3055_s5 + $0x28] sm:$0xff] }
  0xe5   :  { %702 = vmatpush.msra.mxu2 %v464_v45  ;;  %1500 = vset.pattern.permute.xlu2 %v1516_v29 }
  0xe6   :  { %v676_v41 = vadd.f32 %v675_v58, %v673_v12  ;;  %994 = vperm.xlu2 %1500, %v2526_v15   ;;  %915 = vperm.xlu0 %1498, %v835_v22   ;;  %v109_v58 = vld [vmem:[%s3055_s5 + $0x60] sm:$0xff] }
  0xe7   :  { %703 = vmatpush.msra.mxu2 %v463_v46 }
  0xe8   :  { %v677_v27 = vrot.slane %v676_v41, 4 }
  0xe9   :  { %704 = vmatpush.msra.mxu2 %v462_v1  ;;  %v99_v1 = vld [vmem:[%s3055_s5 + $0x10] sm:$0xff] }
  0xea   :  { %v678_v35 = vadd.f32 %v677_v27, %v676_v41  ;;  %990 = vperm.xlu1 %1499, %v2375_v28   ;;  %v100_v41 = vld [vmem:[%s3055_s5 + $0x18] sm:$0xff]  ;;  %v1505_v27 = vld [vmem:[%s3042_s0] ss:$0 sm:$0xff] }
  0xeb   :  { %705 = vmatpush.msra.mxu2 %v461_v37  ;;  %v2553_v26 = vpop.permute.xlu1 %712  ;;  %v745_v4 = vpop.permute.xlu2 %744 }
  0xec   :  { %v679_v14 = vrot.slane %v678_v35, 2  ;;  %v723_v46 = vpop.permute.xlu0 %722  ;;  %v733_v29 = vmul.f32 %v1505_v27, %v2553_v26 }
  0xed   :  { %v735_v33 = vmul.f32 %v1505_v27, %v723_v46 }
  0xee   :  { %v680_v34 = vadd.f32 %v679_v14, %v678_v35  ;;  %1502 = vset.pattern.permute.xlu2 %v3119_v62  ;;  %900 = vperm.xlu0 %1498, %v2526_v15   ;;  %v107_v15 = vld [vmem:[%s3055_s5 + $0x50] sm:$0xff]  ;;  %v842_v35 = vld [vmem:[#allocation4] sm:$0x1] }
  0xef   :  { %1021 = vperm.xlu2 %1502, %v840_v59  }
  0xf0   :  { %v681_v2 = vrot.slane %v680_v34, 1 }
  0xf2   :  { %v682_v38 = vadd.f32 %v681_v2, %v680_v34  ;;  %1501 = vset.pattern.permute.xlu1 %v3119_v62  ;;  %v110_v62 = vld [vmem:[%s3055_s5 + $0x68] sm:$0xff]  ;;  %v97_v34 = vld [vmem:[%s3055_s5] sm:$0xff]  ;;  %v734_v2 = vmul.f32 %v1505_v27, %v718_v0  ;;  %v104_v0 = vld [vmem:[%s3055_s5 + $0x38] sm:$0xff] }
  0xf3   :  { %v2561_v9 = vpop.permute.xlu1 %739  ;;  %1016 = vperm.xlu1 %1501, %v839_v60   ;;  %v728_v21 = vpop.permute.xlu2 %727 }
  0xf4   :  { %v2550_v61 = vadd.f32 %v688_v40, %v682_v38  ;;  %v755_v40 = vpop.permute.xlu0 %754  ;;  %v736_v38 = vmul.f32 %v1505_v27, %v728_v21 }
  0xf6   :  { %706 = vmatmul.f32.vlgmr.msra.gmra.mxu2 %v2550_v61  ;;  %1011 = vperm.xlu0 %1498, %v838_v57   ;;  %v760_v57 = vadd.f32 %v755_v40, %v736_v38 }
  0xf7   :  { %372 = vperm.xlu2 %1502, %v112_v51  }
  0xfb   :  { %1026 = vperm.xlu1 %1501, %v841_v19   ;;  %v771_v53 = vpop.permute.xlu2 %770  ;;  %v758_v19 = vadd.f32 %v745_v4, %v734_v2 }
  0xfc   :  { %v2571_v28 = vpop.permute.xlu1 %766  ;;  %v808_v46 = vpop.permute.xlu0 %807 }
  0xfe   :  { %369 = vperm.xlu0 %1498, %v111_v55  }
  0xff   :  { %363 = vperm.xlu2 %1502, %v109_v58   ;;  %v101_v58 = vld [vmem:[%s3055_s5 + $0x20] sm:$0xff] }
 0x103   :  { %366 = vperm.xlu1 %1501, %v110_v62   ;;  %v793_v50 = vpop.permute.xlu2 %792  ;;  %v757_v62 = vadd.f32 %v2561_v9, %v733_v29 }
 0x105   :  { %v750_v47 = vpop.permute.xlu1 %749 }
 0x106   :  { %360 = vperm.xlu0 %1498, %v108_v42   ;;  %v759_v55 = vadd.f32 %v750_v47, %v735_v33 }
 0x107   :  { %1044 = vperm.xlu2 %1502, %v842_v35  }
 0x10b   :  { %357 = vperm.xlu1 %1501, %v107_v15   ;;  %v803_v43 = vpop.permute.xlu2 %802 }
 0x10e   :  { %v775_v7 = vpop.permute.xlu1 %774  ;;  %354 = vperm.xlu0 %1498, %v106_v52  }
 0x10f   :  { %348 = vperm.xlu2 %1502, %v104_v0  }
 0x113   :  { %351 = vperm.xlu1 %1501, %v105_v36   ;;  %v2619_v12 = vpop.permute.xlu2 %885 }
 0x116   :  { %345 = vperm.xlu0 %1498, %v103_v63  }
 0x117   :  { %v2592_v54 = vpop.permute.xlu1 %797  ;;  %339 = vperm.xlu2 %1502, %v101_v58  }
 0x11b   :  { %342 = vperm.xlu1 %1501, %v102_v39   ;;  %v2635_v14 = vpop.permute.xlu2 %910 }
 0x11e   :  { %336 = vperm.xlu0 %1498, %v100_v41  }
 0x11f   :  { %v2597_v56 = vpop.permute.xlu1 %825 }
 0x123   :  { %333 = vperm.xlu1 %1501, %v99_v1   ;;  %v2648_v4 = vpop.permute.xlu2 %937 }
 0x126   :  { %327 = vperm.xlu0 %1498, %v97_v34  }
 0x127   :  { %v2617_v45 = vpop.permute.xlu1 %895 }
 0x12b   :  { %v2656_v34 = vpop.permute.xlu2 %941 }
 0x130   :  { %v2633_v37 = vpop.permute.xlu1 %933 }
 0x139   :  { %v2646_v21 = vpop.permute.xlu1 %920 }
 0x142   :  { %v2654_v27 = vpop.permute.xlu1 %962 }
 0x14b   :  { %v2663_v40 = vpop.permute.xlu1 %945 }
 0x179   :  { %v707_v22 = vpop.f32.mrf.mxu2 }
 0x17a   :  { %v777_v60 = vperm.slane %v707_v22, 0  ;;  %v2665_v22 = vpop.permute.xlu2 %925 }
 0x17c   :  { %v778_v15 = vmul.f32 %v777_v60, %v763_v49  ;;  %v779_v42 = vmul.f32 %v777_v60, %v2571_v28  ;;  %v780_v59 = vmul.f32 %v777_v60, %v771_v53  ;;  %v781_v52 = vmul.f32 %v777_v60, %v775_v7 }
 0x17d   :  { %v828_v60 = vperm.slane %v2597_v56, 0 }
 0x17e   :  { %v782_v26 = vadd.f32 %v778_v15, %v757_v62  ;;  %v783_v36 = vadd.f32 %v779_v42, %v758_v19  ;;  %v784_v48 = vadd.f32 %v780_v59, %v759_v55  ;;  %v785_v51 = vadd.f32 %v781_v52, %v760_v57  ;;  %v2670_v55 = vpop.permute.xlu1 %986 }
 0x180   :  { %v786_v9 = vmax.f32 %v782_v26, 0.0  ;;  %v787_v47 = vmax.f32 %v783_v36, 0.0  ;;  %v788_v49 = vmax.f32 %v784_v48, 0.0  ;;  %v789_v63 = vmax.f32 %v785_v51, 0.0 }
 0x182   :  { %v810_v28 = vmul.f32 %v793_v50, %v786_v9  ;;  %v811_v7 = vmul.f32 %v2592_v54, %v787_v47  ;;  %v812_v53 = vmul.f32 %v803_v43, %v788_v49  ;;  %v813_v41 = vmul.f32 %v808_v46, %v789_v63  ;;  %v98_v54 = vld [vmem:[%s3055_s5 + $0x8] sm:$0xff]  ;;  %v2661_v43 = vpop.permute.xlu0 %958  ;;  %v2672_v15 = vpop.permute.xlu2 %966 }
 0x183   :  { %330 = vperm.xlu2 %1502, %v98_v54  }
 0x184   :  { %v814_v39 = vadd.f32 %v811_v7, %v810_v28 }
 0x186   :  { %v815_v1 = vadd.f32 %v814_v39, %v812_v53  ;;  %v2676_v59 = vpop.permute.xlu1 %990 }
 0x188   :  { %v816_v35 = vadd.f32 %v815_v1, %v813_v41 }
 0x18a   :  { %v817_v2 = vrot.slane %v816_v35, 4  ;;  %v2668_v62 = vpop.permute.xlu0 %982  ;;  %v2678_v52 = vpop.permute.xlu2 %970 }
 0x18c   :  { %v818_v33 = vadd.f32 %v817_v2, %v816_v35 }
 0x18e   :  { %v819_v50 = vrot.slane %v818_v33, 2  ;;  %v2682_v26 = vpop.permute.xlu1 %1016 }
 0x190   :  { %v820_v38 = vadd.f32 %v819_v50, %v818_v33 }
 0x192   :  { %v821_v29 = vrot.slane %v820_v38, 1  ;;  %v2674_v42 = vpop.permute.xlu0 %890  ;;  %v2684_v56 = vpop.permute.xlu2 %994 }
 0x194   :  { %v822_v19 = vadd.f32 %v821_v29, %v820_v38 }
 0x196   :  { %v829_v57 = vadd.f32 %v828_v60, %v822_v19  ;;  %v2688_v48 = vpop.permute.xlu1 %1026 }
 0x198   :  { %859 = vmatmul.f32.vlgmr.msra.gmra.mxu3 %v829_v57  ;;  %879 = vmatmul.f32.vlgmr.msrb.gmra.mxu0 %v829_v57  ;;  %v2763_v57 = vld [vmem:[%s3110_s24] sm:$0x1] }
 0x19a   :  { %v2680_v0 = vpop.permute.xlu0 %915  ;;  %v2692_v9 = vpop.permute.xlu2 %1021 }
 0x19e   :  { %v367_v63 = vpop.permute.xlu1 %366 }
 0x19f   :  { %vm387_vm10 = vcmp.eq.s32.totalorder %v2147_v3, %v367_v63 }
 0x1a2   :  { %v2686_v36 = vpop.permute.xlu0 %900  ;;  %v373_v49 = vpop.permute.xlu2 %372 }
 0x1a3   :  { %vm389_vm8 = vcmp.eq.s32.totalorder %v2147_v3, %v373_v49 }
 0x1a4   :  { %1396 = vmatpush.msk.msra.mxu0 %vm389_vm8, %v1512_v11  ;;  %1428 = vmatpush.msk.msrb.mxu2 %vm389_vm8, %v1512_v11 }
 0x1a5   :  { %1429 = vmatpush.msk.msra.mxu3 %vm389_vm8, %v1512_v11 }
 0x1a6   :  { %v358_v53 = vpop.permute.xlu1 %357 }
 0x1a7   :  { %vm384_vm13 = vcmp.eq.s32.totalorder %v2147_v3, %v358_v53 }
 0x1aa   :  { %v2690_v51 = vpop.permute.xlu0 %1011  ;;  %v364_v28 = vpop.permute.xlu2 %363 }
 0x1ab   :  { %vm386_vm11 = vcmp.eq.s32.totalorder %v2147_v3, %v364_v28 }
 0x1ae   :  { %v352_v46 = vpop.permute.xlu1 %351 }
 0x1af   :  { %vm382_vm15 = vcmp.eq.s32.totalorder %v2147_v3, %v352_v46 }
 0x1b2   :  { %v370_v47 = vpop.permute.xlu0 %369  ;;  %v2718_v39 = vpop.permute.xlu2 %1044 }
 0x1b3   :  { %vm388_vm9 = vcmp.eq.s32.totalorder %v2147_v3, %v370_v47 }
 0x1b4   :  { %1397 = vmatpush.msk.msra.mxu0 %vm388_vm9, %v1512_v11  ;;  %1430 = vmatpush.msk.msrb.mxu2 %vm388_vm9, %v1512_v11 }
 0x1b5   :  { %1431 = vmatpush.msk.msra.mxu3 %vm388_vm9, %v1512_v11 }
 0x1b6   :  { %1432 = vmatpush.msk.msrb.mxu2 %vm387_vm10, %v1512_v11  ;;  %1398 = vmatpush.msk.msra.mxu0 %vm387_vm10, %v1512_v11  ;;  %v343_v35 = vpop.permute.xlu1 %342 }
 0x1b7   :  { %1433 = vmatpush.msk.msra.mxu3 %vm387_vm10, %v1512_v11  ;;  %vm379_vm2 = vcmp.eq.s32.totalorder %v2147_v3, %v343_v35 }
 0x1b8   :  { %1399 = vmatpush.msk.msra.mxu0 %vm386_vm11, %v1512_v11  ;;  %1434 = vmatpush.msk.msrb.mxu2 %vm386_vm11, %v1512_v11 }
 0x1b9   :  { %1435 = vmatpush.msk.msra.mxu3 %vm386_vm11, %v1512_v11  ;;  %vm3123_vm11 = vcmp.eq.s32.totalorder %v1810_v25, %v1650_v6 }
 0x1ba   :  { %v361_v7 = vpop.permute.xlu0 %360  ;;  %v349_v41 = vpop.permute.xlu2 %348 }
 0x1bb   :  { %vm385_vm12 = vcmp.eq.s32.totalorder %v2147_v3, %v361_v7  ;;  %vm381_vm3 = vcmp.eq.s32.totalorder %v2147_v3, %v349_v41 }
 0x1bc   :  { %1400 = vmatpush.msk.msra.mxu0 %vm385_vm12, %v1512_v11  ;;  %1436 = vmatpush.msk.msrb.mxu2 %vm385_vm12, %v1512_v11 }
 0x1bd   :  { %1437 = vmatpush.msk.msra.mxu3 %vm385_vm12, %v1512_v11  ;;  %vm3124_vm12 = vcmp.eq.s32.totalorder %v1735_v18, %v1664_v10 }
 0x1be   :  { %1401 = vmatpush.msk.msra.mxu0 %vm384_vm13, %v1512_v11  ;;  %1438 = vmatpush.msk.msrb.mxu2 %vm384_vm13, %v1512_v11  ;;  %v334_v54 = vpop.permute.xlu1 %333 }
 0x1bf   :  { %1439 = vmatpush.msk.msra.mxu3 %vm384_vm13, %v1512_v11  ;;  %vm376_vm5 = vcmp.eq.s32.totalorder %v2147_v3, %v334_v54  ;;  %vm3125_vm13 = vcmp.eq.s32.totalorder %v1645_v5, %v1650_v6 }
 0x1c2   :  { %v355_v58 = vpop.permute.xlu0 %354  ;;  %v340_v2 = vpop.permute.xlu2 %339 }
 0x1c3   :  { %vm383_vm14 = vcmp.eq.s32.totalorder %v2147_v3, %v355_v58  ;;  %vm378_vm0 = vcmp.eq.s32.totalorder %v2147_v3, %v340_v2 }
 0x1c4   :  { %1440 = vmatpush.msk.msrb.mxu2 %vm383_vm14, %v1512_v11  ;;  %1402 = vmatpush.msk.msra.mxu0 %vm383_vm14, %v1512_v11 }
 0x1c5   :  { %1441 = vmatpush.msk.msra.mxu3 %vm383_vm14, %v1512_v11  ;;  %vm3126_vm14 = vcmp.eq.s32.totalorder %v1645_v5, %v1664_v10 }
 0x1c6   :  { %1403 = vmatpush.msk.msra.mxu0 %vm382_vm15, %v1512_v11  ;;  %1442 = vmatpush.msk.msrb.mxu2 %vm382_vm15, %v1512_v11 }
 0x1c7   :  { %1443 = vmatpush.msk.msra.mxu3 %vm382_vm15, %v1512_v11  ;;  %vm3127_vm15 = vcmp.eq.s32.totalorder %v1656_v8, %v1650_v6 }
 0x1c8   :  { %1404 = vmatpush.msk.msra.mxu0 %vm381_vm3, %v1512_v11  ;;  %1444 = vmatpush.msk.msrb.mxu2 %vm381_vm3, %v1512_v11 }
 0x1c9   :  { %1445 = vmatpush.msk.msra.mxu3 %vm381_vm3, %v1512_v11  ;;  %vm3128_vm3 = vcmp.eq.s32.totalorder %v1885_v32, %v1664_v10 }
 0x1ca   :  { %v346_v1 = vpop.permute.xlu0 %345 }
 0x1cb   :  { %vm380_vm4 = vcmp.eq.s32.totalorder %v2147_v3, %v346_v1 }
 0x1cc   :  { %1405 = vmatpush.msk.msra.mxu0 %vm380_vm4, %v1512_v11  ;;  %1446 = vmatpush.msk.msrb.mxu2 %vm380_vm4, %v1512_v11 }
 0x1cd   :  { %1447 = vmatpush.msk.msra.mxu3 %vm380_vm4, %v1512_v11  ;;  %vm3129_vm4 = vcmp.eq.s32.totalorder %v1720_v17, %v1664_v10 }
 0x1ce   :  { %1448 = vmatpush.msk.msrb.mxu2 %vm379_vm2, %v1512_v11  ;;  %1406 = vmatpush.msk.msra.mxu0 %vm379_vm2, %v1512_v11 }
 0x1cf   :  { %1449 = vmatpush.msk.msra.mxu3 %vm379_vm2, %v1512_v11  ;;  %vm3130_vm2 = vcmp.eq.s32.totalorder %v1885_v32, %v1650_v6 }
 0x1d0   :  { %1407 = vmatpush.msk.msra.mxu0 %vm378_vm0, %v1512_v11  ;;  %1450 = vmatpush.msk.msrb.mxu2 %vm378_vm0, %v1512_v11 }
 0x1d1   :  { %1451 = vmatpush.msk.msra.mxu3 %vm378_vm0, %v1512_v11  ;;  %vm3131_vm0 = vcmp.eq.s32.totalorder %v1795_v24, %v1650_v6 }
 0x1d2   :  { %v337_v33 = vpop.permute.xlu0 %336 }
 0x1d3   :  { %vm377_vm1 = vcmp.eq.s32.totalorder %v2147_v3, %v337_v33 }
 0x1d4   :  { %1408 = vmatpush.msk.msra.mxu0 %vm377_vm1, %v1512_v11  ;;  %1452 = vmatpush.msk.msrb.mxu2 %vm377_vm1, %v1512_v11 }
 0x1d5   :  { %1453 = vmatpush.msk.msra.mxu3 %vm377_vm1, %v1512_v11  ;;  %vm3132_vm1 = vcmp.eq.s32.totalorder %v1870_v31, %v1664_v10 }
 0x1d6   :  { %1409 = vmatpush.msk.msra.mxu0 %vm376_vm5, %v1512_v11  ;;  %1454 = vmatpush.msk.msrb.mxu2 %vm376_vm5, %v1512_v11 }
 0x1d7   :  { %1455 = vmatpush.msk.msra.mxu3 %vm376_vm5, %v1512_v11  ;;  %vm3133_vm5 = vcmp.eq.s32.totalorder %v1705_v16, %v1664_v10 }
 0x1da   :  { %v328_v38 = vpop.permute.xlu0 %327 }
 0x1db   :  { %vm374_vm7 = vcmp.eq.s32.totalorder %v2147_v3, %v328_v38 }
 0x1dd   :  { %v331_v50 = vpop.permute.xlu2 %330 }
 0x1de   :  { %vm375_vm6 = vcmp.eq.s32.totalorder %v2147_v3, %v331_v50  ;;  %v2768_v3 = vld [vmem:[%s3113_s26] sm:$0x1] }
 0x1df   :  { %1456 = vmatpush.msk.msrb.mxu2 %vm375_vm6, %v1512_v11  ;;  %1410 = vmatpush.msk.msra.mxu0 %vm375_vm6, %v1512_v11  ;;  %vm1049_vm8 = vcmp.eq.s32.totalorder %v2763_v57, %v2768_v3  ;;  %vm1054_vm9 = vcmp.le.s32.totalorder %v2763_v57, %v2768_v3  ;;  %vm1057_vm10 = vcmp.le.s32.totalorder %v2768_v3, %v2763_v57 }
 0x1e0   :  { %1457 = vmatpush.msk.msra.mxu3 %vm375_vm6, %v1512_v11  ;;  %vm3134_vm6 = vcmp.eq.s32.totalorder %v1870_v31, %v1650_v6 }
 0x1e1   :  { %1411 = vmatpush.msk.msra.mxu0 %vm374_vm7, %v1512_v11  ;;  %1458 = vmatpush.msk.msrb.mxu2 %vm374_vm7, %v1512_v11 }
 0x1e2   :  { %1459 = vmatpush.msk.msra.mxu3 %vm374_vm7, %v1512_v11  ;;  %vm3135_vm7 = vcmp.eq.s32.totalorder %v1780_v23, %v1650_v6 }
 0x215   :  { %v880_v29 = vpop.f32.mrf.mxu0 }
 0x216   :  { %v948_v60 = vperm.slane %v880_v29, 0 }
 0x218   :  { %v949_v49 = vmul.f32 %v948_v60, %v2633_v37  ;;  %v950_v53 = vmul.f32 %v948_v60, %v2648_v4  ;;  %v951_v58 = vmul.f32 %v948_v60, %v2656_v34  ;;  %v952_v46 = vmul.f32 %v948_v60, %v2663_v40 }
 0x219   :  { %v975_v4 = vmul.f32 %v2672_v15, %v2550_v61  ;;  %v976_v34 = vmul.f32 %v2678_v52, %v2550_v61  ;;  %v974_v40 = vmul.f32 %v2654_v27, %v2550_v61  ;;  %v1000_v15 = vmul.f32 %v2497_v44, %v2684_v56 }
 0x21b   :  { %v860_v19 = vpop.f32.mrf.mxu3 }
 0x21c   :  { %v903_v47 = vperm.slane %v860_v19, 0 }
 0x21e   :  { %v904_v63 = vmul.f32 %v903_v47, %v2619_v12  ;;  %v905_v11 = vmul.f32 %v903_v47, %v2674_v42  ;;  %v906_v28 = vmul.f32 %v903_v47, %v2617_v45  ;;  %v907_v7 = vmul.f32 %v903_v47, %v2686_v36 }
 0x21f   :  { %v973_v45 = vmul.f32 %v2661_v43, %v2550_v61  ;;  %v999_v43 = vmul.f32 %v2497_v44, %v2676_v59 }
 0x220   :  { %v928_v41 = vadd.f32 %v2635_v14, %v904_v63  ;;  %v929_v37 = vadd.f32 %v2680_v0, %v905_v11  ;;  %v930_v12 = vadd.f32 %v2646_v21, %v906_v28  ;;  %v931_v42 = vadd.f32 %v2665_v22, %v907_v7 }
 0x221   :  { %v997_v21 = vmul.f32 %v2497_v44, %v2668_v62  ;;  %v998_v22 = vmul.f32 %v2497_v44, %v2670_v55 }
 0x222   :  { %v953_v36 = vadd.f32 %v949_v49, %v928_v41  ;;  %v954_v14 = vadd.f32 %v950_v53, %v929_v37  ;;  %v955_v1 = vadd.f32 %v951_v58, %v930_v12  ;;  %v956_v0 = vadd.f32 %v952_v46, %v931_v42 }
 0x223   :  { %v3122_v37 = vmov 0.0  }
 0x224   :  { %v977_v52 = vadd.f32 %v973_v45, %v953_v36  ;;  %v978_v35 = vadd.f32 %v974_v40, %v954_v14  ;;  %v979_v2 = vadd.f32 %v975_v4, %v955_v1  ;;  %v980_v61 = vadd.f32 %v976_v34, %v956_v0 }
 0x225   :  { %v1255_v4 = vsel %vm3123_vm11, 1.0, %v3122_v37  ;;  %v1275_v34 = vsel %vm3124_vm12, 1.0, %v3122_v37  ;;  %v1250_v40 = vsel %vm3125_vm13, 1.0, %v3122_v37  ;;  %v1266_v57 = vsel %vm3126_vm14, 1.0, %v3122_v37 }
 0x226   :  { %v1001_v27 = vadd.f32 %v997_v21, %v977_v52  ;;  %v1002_v33 = vadd.f32 %v998_v22, %v978_v35  ;;  %v1003_v54 = vadd.f32 %v999_v43, %v979_v2  ;;  %v1004_v50 = vadd.f32 %v1000_v15, %v980_v61 }
 0x227   :  { %v1264_v5 = vsel %vm3127_vm15, 1.0, %v3122_v37  ;;  %v1267_v22 = vsel %vm3128_vm3, 1.0, %v3122_v37  ;;  %v1276_v43 = vsel %vm3129_vm4, 1.0, %v3122_v37  ;;  %v1251_v15 = vsel %vm3130_vm2, 1.0, %v3122_v37 }
 0x228   :  { %v1005_v38 = vmax.f32 %v1001_v27, 0.0  ;;  %v1006_v29 = vmax.f32 %v1002_v33, 0.0  ;;  %v1007_v62 = vmax.f32 %v1003_v54, 0.0  ;;  %v1008_v60 = vmax.f32 %v1004_v50, 0.0 }
 0x229   :  { %v1256_v52 = vsel %vm3131_vm0, 1.0, %v3122_v37  ;;  %v1268_v32 = vsel %vm3132_vm1, 1.0, %v3122_v37  ;;  %v1277_v54 = vsel %vm3133_vm5, 1.0, %v3122_v37  ;;  %v1252_v50 = vsel %vm3134_vm6, 1.0, %v3122_v37 }
 0x22a   :  { %v1029_v55 = vmul.f32 %v2690_v51, %v1005_v38  ;;  %v1030_v19 = vmul.f32 %v2682_v26, %v1006_v29  ;;  %v1031_v44 = vmul.f32 %v2692_v9, %v1007_v62  ;;  %v1032_v56 = vmul.f32 %v2688_v48, %v1008_v60 }
 0x22b   :  { %v1047_v26 = vperm.slane %v2718_v39, 0  ;;  %v1378_v9 = vsel %vm1054_vm9, 1.0, %v3122_v37  ;;  %v1379_v48 = vsel %vm1057_vm10, 1.0, %v3122_v37  ;;  %v1257_v38 = vsel %vm3135_vm7, 1.0, %v3122_v37 }
 0x22c   :  { %v1033_v59 = vadd.f32 %v1030_v19, %v1029_v55  ;;  %vm3137_vm9 = vcmp.eq.s32.totalorder %v1678_v13, %v1664_v10  ;;  %vm3138_vm10 = vcmp.eq.s32.totalorder %v1855_v30, %v1650_v6  ;;  %vm3139_vm11 = vcmp.eq.s32.totalorder %v1757_v20, %v1650_v6 }
 0x22d   :  { %v1278_v19 = vsel %vm3137_vm9, 1.0, %v3122_v37  ;;  %vm3145_vm15 = vcmp.eq.s32.totalorder %v1735_v18, %v1650_v6  ;;  %vm3146_vm3 = vcmp.eq.s32.totalorder %v1810_v25, %v1664_v10  ;;  %vm3147_vm4 = vcmp.eq.s32.totalorder %v1656_v8, %v1664_v10  ;;  %v3150_v25 = vld [vmem:[#allocation6_spill] sm:$0xff] }
 0x22e   :  { %v1034_v47 = vadd.f32 %v1033_v59, %v1031_v44  ;;  %v1253_v44 = vsel %vm3138_vm10, 1.0, %v3122_v37  ;;  %v1258_v59 = vsel %vm3139_vm11, 1.0, %v3122_v37  ;;  %v1280_v18 = vsel %vm3147_vm4, 1.0, %v3122_v37 }
 0x22f   :  { %vm3148_vm2 = vcmp.eq.s32.totalorder %v1720_v17, %v1650_v6  ;;  %vm3149_vm0 = vcmp.eq.s32.totalorder %v1795_v24, %v1664_v10  ;;  %vm3151_vm1 = vcmp.eq.s32.totalorder %v3150_v25, %v1664_v10  ;;  %vm3152_vm5 = vcmp.eq.s32.totalorder %v1705_v16, %v1650_v6 }
 0x230   :  { %v1035_v49 = vadd.f32 %v1034_v47, %v1032_v56  ;;  %v1272_v8 = vsel %vm3149_vm0, 1.0, %v3122_v37  ;;  %v1281_v17 = vsel %vm3151_vm1, 1.0, %v3122_v37  ;;  %vm3153_vm6 = vcmp.eq.s32.totalorder %v1780_v23, %v1664_v10 }
 0x231   :  { %v1273_v24 = vsel %vm3153_vm6, 1.0, %v3122_v37  ;;  %vm3154_vm7 = vcmp.eq.s32.totalorder %v1678_v13, %v1650_v6  ;;  %vm3156_vm9 = vcmp.eq.s32.totalorder %v3150_v25, %v1650_v6 }
 0x232   :  { %v1036_v63 = vrot.slane %v1035_v49, 4  ;;  %v1262_v16 = vsel %vm3154_vm7, 1.0, %v3122_v37  ;;  %v1265_v23 = vsel %vm3156_vm9, 1.0, %v3122_v37 }
 0x234   :  { %v1037_v11 = vadd.f32 %v1036_v63, %v1035_v49 }
 0x236   :  { %v1038_v28 = vrot.slane %v1037_v11, 2 }
 0x238   :  { %v1039_v7 = vadd.f32 %v1038_v28, %v1037_v11  ;;  %v3142_v28 = vld [vmem:[#allocation7_spill] sm:$0xff] }
 0x239   :  { %vm3143_vm13 = vcmp.eq.s32.totalorder %v3142_v28, %v1664_v10  ;;  %vm3157_vm10 = vcmp.eq.s32.totalorder %v3142_v28, %v1650_v6 }
 0x23a   :  { %v1040_v51 = vrot.slane %v1039_v7, 1  ;;  %v1263_v13 = vsel %vm3157_vm10, 1.0, %v3122_v37 }
 0x23c   :  { %v1041_v53 = vadd.f32 %v1040_v51, %v1039_v7  ;;  %v1279_v7 = vsel %vm3143_vm13, 1.0, %v3122_v37 }
 0x23e   :  { %v1048_v58 = vadd.f32 %v1047_v26, %v1041_v53  ;;  %v1259_v26 = vsel %vm3145_vm15, 1.0, %v3122_v37 }
 0x240   :  { %v1050_v46 = vmul.f32 0.5, %v1048_v58 }
 0x242   :  { %v1051_v41 = vmul.f32 1.442695, %v1050_v46 }
 0x244   :  { %1509 = vpow2.f32 %v1051_v41 }
 0x24a   :  { %v1510_v12 = vpop.eup %1509 }
 0x24b   :  { %v1053_v39 = vsel %vm1049_vm8, %v1510_v12, %v1048_v58  ;;  %vm3136_vm8 = vcmp.eq.s32.totalorder %v1855_v30, %v1664_v10  ;;  %v3140_v30 = vld [vmem:[#allocation8_spill] sm:$0xff] }
 0x24c   :  { %v1060_v42 = vmul.f32 %v1378_v9, %v1053_v39  ;;  %v1080_v45 = vmul.f32 %v1379_v48, %v1053_v39  ;;  %v1269_v31 = vsel %vm3136_vm8, 1.0, %v3122_v37  ;;  %vm3141_vm12 = vcmp.eq.s32.totalorder %v3140_v30, %v1664_v10 }
 0x24d   :  { %v1270_v11 = vsel %vm3141_vm12, 1.0, %v3122_v37  ;;  %vm3144_vm14 = vcmp.eq.s32.totalorder %v3140_v30, %v1650_v6  ;;  %v1271_v9 = vsel %vm3146_vm3, 1.0, %v3122_v37  ;;  %v1260_v48 = vsel %vm3148_vm2, 1.0, %v3122_v37 }
 0x24e   :  { %v2836_v3 = vperm.slane %v1060_v42, 0  ;;  %v2838_v36 = vperm.slane %v1080_v45, 0  ;;  %v1254_v51 = vsel %vm3144_vm14, 1.0, %v3122_v37  ;;  %v1261_v45 = vsel %vm3152_vm5, 1.0, %v3122_v37 }
 0x24f   :  { %vm3155_vm8 = vcmp.eq.s32.totalorder %v1757_v20, %v1664_v10 }
 0x250   :  { %v1084_v14 = vmul.f32 %v1266_v57, %v2838_v36  ;;  %v1093_v1 = vmul.f32 %v1275_v34, %v2838_v36  ;;  %v1064_v0 = vmul.f32 %v1250_v40, %v2836_v3  ;;  %v1069_v21 = vmul.f32 %v1255_v4, %v2836_v3 }
 0x251   :  { %v2865_v35 = vmul.f32 %v1264_v5, %v2836_v3  ;;  %v1085_v2 = vmul.f32 %v1267_v22, %v2838_v36  ;;  %v1094_v61 = vmul.f32 %v1276_v43, %v2838_v36  ;;  %v1065_v27 = vmul.f32 %v1251_v15, %v2836_v3 }
 0x252   :  { %1116 = vmatmul.f32.vlgmr.msrb.gmra.mxu1 %v1084_v14  ;;  %1143 = vmatmul.f32.vlgmr.msrb.gmra.mxu3 %v1093_v1  ;;  %v1070_v33 = vmul.f32 %v1256_v52, %v2836_v3  ;;  %v1086_v29 = vmul.f32 %v1268_v32, %v2838_v36  ;;  %v1095_v62 = vmul.f32 %v1277_v54, %v2838_v36  ;;  %v1274_v1 = vsel %vm3155_vm8, 1.0, %v3122_v37 }
 0x253   :  { %1181 = vmatmul.f32.vlgmr.msra.gmra.mxu0 %v1064_v0  ;;  %1196 = vmatmul.f32.vlgmr.msrb.gmra.mxu2 %v1069_v21  ;;  %v1066_v60 = vmul.f32 %v1252_v50, %v2836_v3  ;;  %v1071_v55 = vmul.f32 %v1257_v38, %v2836_v3  ;;  %v1087_v56 = vmul.f32 %v1269_v31, %v2838_v36 }
 0x254   :  { %v1096_v47 = vmul.f32 %v1278_v19, %v2838_v36  ;;  %v1067_v49 = vmul.f32 %v1253_v44, %v2836_v3  ;;  %v1072_v63 = vmul.f32 %v1258_v59, %v2836_v3  ;;  %v1088_v53 = vmul.f32 %v1270_v11, %v2838_v36 }
 0x255   :  { %v1097_v58 = vmul.f32 %v1279_v7, %v2838_v36  ;;  %v1068_v46 = vmul.f32 %v1254_v51, %v2836_v3  ;;  %v1073_v41 = vmul.f32 %v1259_v26, %v2836_v3  ;;  %v1089_v12 = vmul.f32 %v1271_v9, %v2838_v36 }
 0x256   :  { %v1098_v39 = vmul.f32 %v1280_v18, %v2838_v36  ;;  %v1074_v42 = vmul.f32 %v1260_v48, %v2836_v3  ;;  %v1090_v4 = vmul.f32 %v1272_v8, %v2838_v36  ;;  %v1099_v34 = vmul.f32 %v1281_v17, %v2838_v36 }
 0x257   :  { %v1075_v40 = vmul.f32 %v1261_v45, %v2836_v3  ;;  %v1091_v57 = vmul.f32 %v1273_v24, %v2838_v36  ;;  %v1076_v14 = vmul.f32 %v1262_v16, %v2836_v3  ;;  %v1092_v0 = vmul.f32 %v1274_v1, %v2838_v36 }
 0x258   :  { %v1079_v21 = vmul.f32 %v1265_v23, %v2836_v3  ;;  %v1077_v5 = vmul.f32 %v1263_v13, %v2836_v3 }
 0x25a   :  { %1119 = vmatmul.f32.gmra.mxu1 %v1085_v2  ;;  %1146 = vmatmul.f32.gmra.mxu3 %v1094_v61 }
 0x25b   :  { %1184 = vmatmul.f32.gmra.mxu0 %v1065_v27  ;;  %1199 = vmatmul.f32.gmra.mxu2 %v1070_v33 }
 0x262   :  { %1122 = vmatmul.f32.gmra.mxu1 %v1086_v29  ;;  %1149 = vmatmul.f32.gmra.mxu3 %v1095_v62 }
 0x263   :  { %1187 = vmatmul.f32.gmra.mxu0 %v1066_v60  ;;  %1202 = vmatmul.f32.gmra.mxu2 %v1071_v55 }
 0x26a   :  { %1125 = vmatmul.f32.gmra.mxu1 %v1087_v56  ;;  %1152 = vmatmul.f32.gmra.mxu3 %v1096_v47 }
 0x26b   :  { %1190 = vmatmul.f32.gmra.mxu0 %v1067_v49  ;;  %1205 = vmatmul.f32.gmra.mxu2 %v1072_v63 }
 0x272   :  { %1128 = vmatmul.f32.gmra.mxu1 %v1088_v53  ;;  %1155 = vmatmul.f32.gmra.mxu3 %v1097_v58 }
 0x273   :  { %1193 = vmatmul.f32.gmra.mxu0 %v1068_v46  ;;  %1208 = vmatmul.f32.gmra.mxu2 %v1073_v41 }
 0x27a   :  { %1131 = vmatmul.f32.gmra.mxu1 %v1089_v12  ;;  %1158 = vmatmul.f32.gmra.mxu3 %v1098_v39 }
 0x27b   :  { %1211 = vmatmul.f32.gmra.mxu2 %v1074_v42 }
 0x282   :  { %1134 = vmatmul.f32.gmra.mxu1 %v1090_v4  ;;  %1161 = vmatmul.f32.gmra.mxu3 %v1099_v34 }
 0x283   :  { %1214 = vmatmul.f32.gmra.mxu2 %v1075_v40 }
 0x28a   :  { %1137 = vmatmul.f32.gmra.mxu1 %v1091_v57  ;;  %1223 = vmatmul.f32.vlgmr.msra.gmra.mxu3 %v2865_v35 }
 0x28b   :  { %1217 = vmatmul.f32.gmra.mxu2 %v1076_v14 }
 0x292   :  { %1140 = vmatmul.f32.gmra.mxu1 %v1092_v0  ;;  %1226 = vmatmul.f32.gmra.mxu3 %v1079_v21 }
 0x293   :  { %1220 = vmatmul.f32.gmra.mxu2 %v1077_v5 }
 0x2cf   :  { %v1117_v10 = vpop.f32.mrf.mxu1 }
 0x2d0   :  { %v1182_v20 = vpop.f32.mrf.mxu0 }
 0x2d1   :  { %v1183_v22 = vadd.f32 %v1182_v20, %v1117_v10 }
 0x2d3   :  { %1230 = vst [vmem:[%s3057_s22] sm:$0xff] %v1183_v22 }
 0x2d5   :  { %v1144_v43 = vpop.f32.mrf.mxu3 }
 0x2d6   :  { %v1197_v15 = vpop.f32.mrf.mxu2 }
 0x2d7   :  { %v1120_v6 = vpop.f32.mrf.mxu1 }
 0x2d8   :  { %v1185_v37 = vpop.f32.mrf.mxu0 }
 0x2d9   :  { %v1186_v52 = vadd.f32 %v1185_v37, %v1120_v6 }
 0x2db   :  { %1231 = vst [vmem:[%s3057_s22 + $0x8] sm:$0xff] %v1186_v52 }
 0x2dd   :  { %v1147_v3 = vpop.f32.mrf.mxu3 }
 0x2de   :  { %v1200_v36 = vpop.f32.mrf.mxu2 }
 0x2df   :  { %v1123_v35 = vpop.f32.mrf.mxu1 }
 0x2e0   :  { %v1188_v2 = vpop.f32.mrf.mxu0 }
 0x2e1   :  { %v1189_v61 = vadd.f32 %v1188_v2, %v1123_v35 }
 0x2e3   :  { %1232 = vst [vmem:[%s3057_s22 + $0x10] sm:$0xff] %v1189_v61 }
 0x2e5   :  { %v1150_v27 = vpop.f32.mrf.mxu3 }
 0x2e6   :  { %v1203_v33 = vpop.f32.mrf.mxu2 }
 0x2e7   :  { %v1126_v32 = vpop.f32.mrf.mxu1 }
 0x2e8   :  { %v1191_v54 = vpop.f32.mrf.mxu0 }
 0x2e9   :  { %v1192_v50 = vadd.f32 %v1191_v54, %v1126_v32 }
 0x2eb   :  { %1233 = vst [vmem:[%s3057_s22 + $0x18] sm:$0xff] %v1192_v50 }
 0x2ed   :  { %v1153_v38 = vpop.f32.mrf.mxu3 }
 0x2ee   :  { %v1206_v29 = vpop.f32.mrf.mxu2 }
 0x2ef   :  { %v1129_v62 = vpop.f32.mrf.mxu1 }
 0x2f0   :  { %v1194_v60 = vpop.f32.mrf.mxu0 }
 0x2f1   :  { %v1195_v55 = vadd.f32 %v1194_v60, %v1129_v62 }
 0x2f3   :  { %1234 = vst [vmem:[%s3057_s22 + $0x20] sm:$0xff] %v1195_v55 }
 0x2f5   :  { %v1156_v31 = vpop.f32.mrf.mxu3 }
 0x2f6   :  { %v1209_v19 = vpop.f32.mrf.mxu2 }
 0x2f7   :  { %v1210_v44 = vadd.f32 %v1209_v19, %v1144_v43  ;;  %v1132_v59 = vpop.f32.mrf.mxu1 }
 0x2f8   :  { %v1198_v56 = vadd.f32 %v1197_v15, %v1132_v59 }
 0x2f9   :  { %1239 = vst [vmem:[%s3057_s22 + $0x48] sm:$0xff] %v1210_v44 }
 0x2fa   :  { %1235 = vst [vmem:[%s3057_s22 + $0x28] sm:$0xff] %v1198_v56 }
 0x2fd   :  { %v1159_v47 = vpop.f32.mrf.mxu3 }
 0x2fe   :  { %v1212_v49 = vpop.f32.mrf.mxu2 }
 0x2ff   :  { %v1213_v63 = vadd.f32 %v1212_v49, %v1147_v3  ;;  %v1135_v30 = vpop.f32.mrf.mxu1 }
 0x300   :  { %v1201_v11 = vadd.f32 %v1200_v36, %v1135_v30 }
 0x301   :  { %1240 = vst [vmem:[%s3057_s22 + $0x50] sm:$0xff] %v1213_v63 }
 0x302   :  { %1236 = vst [vmem:[%s3057_s22 + $0x30] sm:$0xff] %v1201_v11 }
 0x305   :  { %v1162_v28 = vpop.f32.mrf.mxu3 }
 0x306   :  { %v1215_v7 = vpop.f32.mrf.mxu2 }
 0x307   :  { %v1216_v51 = vadd.f32 %v1215_v7, %v1150_v27  ;;  %v1138_v26 = vpop.f32.mrf.mxu1 }
 0x308   :  { %v1204_v53 = vadd.f32 %v1203_v33, %v1138_v26 }
 0x309   :  { %1241 = vst [vmem:[%s3057_s22 + $0x58] sm:$0xff] %v1216_v51 }
 0x30a   :  { %1237 = vst [vmem:[%s3057_s22 + $0x38] sm:$0xff] %v1204_v53 }
 0x30d   :  { %v1224_v58 = vpop.f32.mrf.mxu3 }
 0x30e   :  { %v1218_v46 = vpop.f32.mrf.mxu2  ;;  %v1225_v41 = vadd.f32 %v1224_v58, %v1159_v47 }
 0x30f   :  { %v1219_v9 = vadd.f32 %v1218_v46, %v1153_v38  ;;  %v1141_v18 = vpop.f32.mrf.mxu1 }
 0x310   :  { %1244 = vst [vmem:[%s3057_s22 + $0x70] sm:$0xff] %v1225_v41  ;;  %v1207_v48 = vadd.f32 %v1206_v29, %v1141_v18 }
 0x311   :  { %1242 = vst [vmem:[%s3057_s22 + $0x60] sm:$0xff] %v1219_v9 }
 0x312   :  { %1238 = vst [vmem:[%s3057_s22 + $0x40] sm:$0xff] %v1207_v48 }
 0x315   :  { %v1227_v12 = vpop.f32.mrf.mxu3 }
 0x316   :  { %v1221_v39 = vpop.f32.mrf.mxu2  ;;  %v1228_v42 = vadd.f32 %v1227_v12, %v1162_v28 }
 0x317   :  { %v1222_v8 = vadd.f32 %v1221_v39, %v1156_v31 }
 0x318   :  { %1245 = vst [vmem:[%s3057_s22 + $0x78] sm:$0xff] %v1228_v42 }
 0x319   :  { %1243 = vst [vmem:[%s3057_s22 + $0x68] sm:$0xff] %v1222_v8 }

</bundles_post_ra>
